<compile_context>
chip_gen: v7x
topology: tpu7x:2x2x1
jax: 0.10.0
libtpu: 0.0.40
codegen_flags: <defaults>
</compile_context>

<pallas_src>
import jax
import jax.numpy as jnp
import numpy as np
from jax.experimental import pallas as pl
from jax.experimental.pallas import tpu as pltpu


def _round_up(v, m):
    return (v + m - 1) // m * m


def _scatter_self_kernel(dstm_ref, msg_ref, x_ref, w_self_ref, b_ref,
                         out_ref, acc_sc):
    i = pl.program_id(0)                 # node-tile index  ("parallel")
    e = pl.program_id(1)                 # edge-tile index  (reduction, "arbitrary")
    t_n = acc_sc.shape[0]
    t_e = dstm_ref.shape[1]

    @pl.when(e == 0)
    def _init():
        acc_sc[...] = jnp.zeros_like(acc_sc)

    # Scatter one-hot for this node tile.  Edge-sampling mask and edge padding
    # are folded into dst as a -1 sentinel, which never matches row_iota >= 0.
    dstm = dstm_ref[...]                                               # [1, tE] int32
    row_iota = jax.lax.broadcasted_iota(jnp.int32, (t_n, t_e), 0) + i * t_n
    s = (dstm == row_iota).astype(jnp.bfloat16)                        # [tN, tE]

    # Scatter-add of precomputed per-edge messages (bf16 MXU, f32 accumulation).
    acc_sc[...] += jnp.dot(s, msg_ref[...], preferred_element_type=jnp.float32)

    @pl.when(e == pl.num_programs(1) - 1)
    def _finalize():
        # Self path (self_msg='concat' -> separate linear) in exact f32 + bias.
        self_out = jnp.dot(x_ref[...], w_self_ref[...],
                           preferred_element_type=jnp.float32)
        out_ref[...] = self_out + acc_sc[...] + b_ref[...]


def general_sample_edge_conv(x, edge_index, edge_attr, w_self, w_msg, bias,
                             keep_edge, mask_key, *, tile_n=256, tile_e=512):
    """x:[N,din] f32, edge_index:[2,E] int, edge_attr:[E,de] f32,
       w_self:[dout,din], w_msg:[dout,din+de], bias:[dout]  (PyTorch Linear layout).
       Returns (out [N,dout] f32, edge_mask [E] bool)."""
    N, din = x.shape
    E = edge_index.shape[1]
    de = edge_attr.shape[1]
    dout = w_self.shape[0]

    # ---- edge sampling (torch.rand(E) < keep_edge), JAX RNG in the wrapper ---------
    edge_mask = jax.random.uniform(mask_key, (E,)) < keep_edge

    # ---- pad to MXU / vreg friendly shapes ------------------------------------------
    n_pad = _round_up(max(N, tile_n), tile_n)
    e_pad = _round_up(max(E, tile_e), tile_e)
    din_p = _round_up(din, 128)
    dout_p = _round_up(dout, 128)

    src = edge_index[0].astype(jnp.int32)
    dst = edge_index[1].astype(jnp.int32)

    # ---- pass 1 (XLA): per-edge messages, computed once for the whole graph ---------
    # msg_e = concat(x[src_e], edge_attr_e) @ W_msg^T   (bf16 MXU inputs, f32 accum)
    x_src = jnp.take(x.astype(jnp.float32), src, axis=0)              # [E, din]
    inp = jnp.concatenate([x_src, edge_attr.astype(jnp.float32)], axis=-1)
    msg = jnp.dot(inp.astype(jnp.bfloat16),
                  w_msg.T.astype(jnp.bfloat16),
                  preferred_element_type=jnp.float32).astype(jnp.bfloat16)  # [E, dout]
    msg_p = jnp.pad(msg, ((0, e_pad - E), (0, dout_p - dout)))        # bf16

    # Edge-sampling mask + edge padding folded into dst as a -1 sentinel.
    dst_masked = jnp.where(edge_mask, dst, -1)
    dstm2d = jnp.pad(dst_masked, (0, e_pad - E), constant_values=-1).reshape(1, e_pad)

    # Node features / self weights / bias (exact f32 path).
    x_p = jnp.pad(x.astype(jnp.float32), ((0, n_pad - N), (0, din_p - din)))
    w_self_t = jnp.pad(w_self.T.astype(jnp.float32),
                       ((0, din_p - din), (0, dout_p - dout)))
    b2 = jnp.pad(bias.astype(jnp.float32), (0, dout_p - dout)).reshape(1, dout_p)

    grid = (n_pad // tile_n, e_pad // tile_e)

    # ---- pass 2 (Pallas): masked scatter-add fused with self linear + bias ----------
    out_p = pl.pallas_call(
        _scatter_self_kernel,
        out_shape=jax.ShapeDtypeStruct((n_pad, dout_p), jnp.float32),
        grid=grid,
        in_specs=[
            pl.BlockSpec((1, tile_e), lambda i, e: (0, e)),        # masked dst ids
            pl.BlockSpec((tile_e, dout_p), lambda i, e: (e, 0)),   # per-edge messages
            pl.BlockSpec((tile_n, din_p), lambda i, e: (i, 0)),    # x tile (DMA'd once
                                                                   #  per node tile)
            pl.BlockSpec((din_p, dout_p), lambda i, e: (0, 0)),    # W_self^T
            pl.BlockSpec((1, dout_p), lambda i, e: (0, 0)),        # bias
        ],
        out_specs=pl.BlockSpec((tile_n, dout_p), lambda i, e: (i, 0)),
        scratch_shapes=[
            pltpu.VMEM((tile_n, dout_p), jnp.float32),             # node-tile accumulator
        ],
        compiler_params=pltpu.CompilerParams(
            dimension_semantics=("parallel", "arbitrary"),
            # well under v7x's 64 MiB physical VMEM; per-step footprint is ~1 MiB
            vmem_limit_bytes=48 * 1024 * 1024,
        ),
    )(dstm2d, msg_p, x_p, w_self_t, b2)

    return out_p[:N, :dout], edge_mask


def _reference(x, edge_index, edge_attr, edge_mask, w_self, w_msg, bias):
    src, dst = edge_index[0], edge_index[1]
    inp = jnp.concatenate([x[src], edge_attr], axis=-1)
    msg = inp @ w_msg.T
    msg = msg * edge_mask[:, None]
    agg = jax.ops.segment_sum(msg, dst, num_segments=x.shape[0])
    return x @ w_self.T + agg + bias[None, :]


if __name__ == "__main__":
    key = jax.random.PRNGKey(0)
    k_x, k_ei, k_ea, k_ws, k_wm, k_b, k_mask = jax.random.split(key, 7)

    N, E = 200, 700                 # padded internally to 256 nodes / 1024 edges
    dim_in, dim_out, edge_dim = 48, 40, 24
    keep_edge = 0.5

    x = jax.random.normal(k_x, (N, dim_in), dtype=jnp.float32)
    edge_index = jax.random.randint(k_ei, (2, E), 0, N, dtype=jnp.int32)
    edge_attr = jax.random.normal(k_ea, (E, edge_dim), dtype=jnp.float32)

    # deterministic synthetic parameters (PyTorch Linear layout [out, in])
    w_self = jax.random.normal(k_ws, (dim_out, dim_in), dtype=jnp.float32) * 0.1
    w_msg = jax.random.normal(k_wm, (dim_out, dim_in + edge_dim), dtype=jnp.float32) * 0.1
    bias = jax.random.normal(k_b, (dim_out,), dtype=jnp.float32) * 0.1

    out, edge_mask = general_sample_edge_conv(
        x, edge_index, edge_attr, w_self, w_msg, bias, keep_edge, k_mask)
    out = jax.block_until_ready(out)

    ref = _reference(x, edge_index, edge_attr, edge_mask, w_self, w_msg, bias)
    # tolerance reflects the intentional bf16 message path (per perf review); the
    # self path, the bias and all accumulation stay f32.
    np.testing.assert_allclose(np.asarray(out), np.asarray(ref), rtol=5e-2, atol=5e-2)

    print("KERNEL_OK")
</pallas_src>

<mosaic_0001>
module attributes {stable_mosaic.version = 11 : i64} {
  func.func @_scatter_self_kernel(%arg0: i32, %arg1: i32, %arg2: memref<1x512xi32, #tpu.memory_space<vmem>>, %arg3: memref<512x128xbf16, #tpu.memory_space<vmem>>, %arg4: memref<256x128xf32, #tpu.memory_space<vmem>>, %arg5: memref<128x128xf32, #tpu.memory_space<vmem>>, %arg6: memref<1x128xf32, #tpu.memory_space<vmem>>, %arg7: memref<256x128xf32, #tpu.memory_space<vmem>>, %arg8: memref<256x128xf32, #tpu.memory_space<vmem>>) attributes {dimension_semantics = [#tpu.dimension_semantics<parallel>, #tpu.dimension_semantics<arbitrary>], iteration_bounds = array<i64: 1, 2>, scalar_prefetch = 0 : i64, scratch_operands = 1 : i64, tpu.core_type = #tpu.core_type<tc>, window_params = [{transform_indices = @transform_0, window_bounds = array<i64: 1, 512>}, {transform_indices = @transform_1, window_bounds = array<i64: 512, 128>}, {transform_indices = @transform_2, window_bounds = array<i64: 256, 128>}, {pipeline_mode = #tpu.pipeline_mode<synchronous>, transform_indices = @transform_3, window_bounds = array<i64: 128, 128>}, {pipeline_mode = #tpu.pipeline_mode<synchronous>, transform_indices = @transform_4, window_bounds = array<i64: 1, 128>}, {transform_indices = @transform_5, window_bounds = array<i64: 256, 128>}]} {
    %c0_i32 = arith.constant 0 : i32
    %0 = arith.cmpi eq, %arg1, %c0_i32 : i32
    %1 = arith.extui %0 : i1 to i32
    %c0_i32_0 = arith.constant 0 : i32
    %2 = arith.cmpi ne, %1, %c0_i32_0 : i32
    scf.if %2 {
      %cst_9 = arith.constant 0.000000e+00 : f32
      %21 = vector.broadcast %cst_9 : f32 to vector<256x128xf32>
      %c0_10 = arith.constant 0 : index
      %c0_11 = arith.constant 0 : index
      %22 = vector.load %arg8[%c0_10, %c0_11] : memref<256x128xf32, #tpu.memory_space<vmem>>, vector<256x128xf32>
      tpu.vector_store %arg8[%c0_10, %c0_11], %21 {strides = array<i32>} : memref<256x128xf32, #tpu.memory_space<vmem>>, vector<256x128xf32>,
    } else {
    }
    %c0 = arith.constant 0 : index
    %c0_1 = arith.constant 0 : index
    %3 = vector.load %arg2[%c0, %c0_1] : memref<1x512xi32, #tpu.memory_space<vmem>>, vector<1x512xi32>
    %4 = tpu.iota {dimensions = array<i32: 0>} : vector<256x512xi32>
    %c256_i32 = arith.constant 256 : i32
    %5 = arith.muli %arg0, %c256_i32 : i32
    %6 = vector.broadcast %5 : i32 to vector<256x512xi32>
    %7 = arith.addi %4, %6 : vector<256x512xi32>
    %8 = vector.broadcast %3 : vector<1x512xi32> to vector<256x512xi32>
    %9 = arith.cmpi eq, %8, %7 : vector<256x512xi32>
    %10 = arith.extui %9 : vector<256x512xi1> to vector<256x512xi32>
    %11 = arith.sitofp %10 : vector<256x512xi32> to vector<256x512xf32>
    %12 = arith.truncf %11 : vector<256x512xf32> to vector<256x512xbf16>
    %c0_2 = arith.constant 0 : index
    %c0_3 = arith.constant 0 : index
    %13 = vector.load %arg8[%c0_2, %c0_3] : memref<256x128xf32, #tpu.memory_space<vmem>>, vector<256x128xf32>
    %c0_4 = arith.constant 0 : index
    %c0_5 = arith.constant 0 : index
    %14 = vector.load %arg3[%c0_4, %c0_5] : memref<512x128xbf16, #tpu.memory_space<vmem>>, vector<512x128xbf16>
    %cst = arith.constant dense<0.000000e+00> : vector<256x128xf32>
    %15 = tpu.matmul %12, %14, %cst {dimension_numbers = #tpu.dot_dimension_numbers<[1], [0], [0], [1], [0, 0, 1, 1], [], []>} : vector<256x512xbf16>, vector<512x128xbf16>, vector<256x128xf32> -> vector<256x128xf32>
    %16 = arith.addf %13, %15 : vector<256x128xf32>
    %c0_6 = arith.constant 0 : index
    %c0_7 = arith.constant 0 : index
    %17 = vector.load %arg8[%c0_6, %c0_7] : memref<256x128xf32, #tpu.memory_space<vmem>>, vector<256x128xf32>
    tpu.vector_store %arg8[%c0_6, %c0_7], %16 {strides = array<i32>} : memref<256x128xf32, #tpu.memory_space<vmem>>, vector<256x128xf32>,
    %c1_i32 = arith.constant 1 : i32
    %18 = arith.cmpi eq, %arg1, %c1_i32 : i32
    %19 = arith.extui %18 : i1 to i32
    %c0_i32_8 = arith.constant 0 : i32
    %20 = arith.cmpi ne, %19, %c0_i32_8 : i32
    scf.if %20 {
      %c0_9 = arith.constant 0 : index
      %c0_10 = arith.constant 0 : index
      %21 = vector.load %arg4[%c0_9, %c0_10] : memref<256x128xf32, #tpu.memory_space<vmem>>, vector<256x128xf32>
      %c0_11 = arith.constant 0 : index
      %c0_12 = arith.constant 0 : index
      %22 = vector.load %arg5[%c0_11, %c0_12] : memref<128x128xf32, #tpu.memory_space<vmem>>, vector<128x128xf32>
      %cst_13 = arith.constant dense<0.000000e+00> : vector<256x128xf32>
      %23 = tpu.matmul %21, %22, %cst_13 {dimension_numbers = #tpu.dot_dimension_numbers<[1], [0], [0], [1], [0, 0, 1, 1], [], []>} : vector<256x128xf32>, vector<128x128xf32>, vector<256x128xf32> -> vector<256x128xf32>
      %c0_14 = arith.constant 0 : index
      %c0_15 = arith.constant 0 : index
      %24 = vector.load %arg8[%c0_14, %c0_15] : memref<256x128xf32, #tpu.memory_space<vmem>>, vector<256x128xf32>
      %25 = arith.addf %23, %24 : vector<256x128xf32>
      %c0_16 = arith.constant 0 : index
      %c0_17 = arith.constant 0 : index
      %26 = vector.load %arg6[%c0_16, %c0_17] : memref<1x128xf32, #tpu.memory_space<vmem>>, vector<1x128xf32>
      %27 = vector.broadcast %26 : vector<1x128xf32> to vector<256x128xf32>
      %28 = arith.addf %25, %27 : vector<256x128xf32>
      %c0_18 = arith.constant 0 : index
      %c0_19 = arith.constant 0 : index
      %29 = vector.load %arg7[%c0_18, %c0_19] : memref<256x128xf32, #tpu.memory_space<vmem>>, vector<256x128xf32>
      tpu.vector_store %arg7[%c0_18, %c0_19], %28 {strides = array<i32>} : memref<256x128xf32, #tpu.memory_space<vmem>>, vector<256x128xf32>,
    } else {
    }
    return
  }
  func.func @transform_0(%arg0: i32, %arg1: i32) -> (i32, i32) {
    %c0_i32 = arith.constant 0 : i32
    %c0_i32_0 = arith.constant 0 : i32
    return %c0_i32, %arg1 : i32, i32
  }
  func.func @transform_1(%arg0: i32, %arg1: i32) -> (i32, i32) {
    %c0_i32 = arith.constant 0 : i32
    %c0_i32_0 = arith.constant 0 : i32
    return %arg1, %c0_i32 : i32, i32
  }
  func.func @transform_2(%arg0: i32, %arg1: i32) -> (i32, i32) {
    %c0_i32 = arith.constant 0 : i32
    %c0_i32_0 = arith.constant 0 : i32
    return %arg0, %c0_i32 : i32, i32
  }
  func.func @transform_3(%arg0: i32, %arg1: i32) -> (i32, i32) {
    %c0_i32 = arith.constant 0 : i32
    %c0_i32_0 = arith.constant 0 : i32
    %c0_i32_1 = arith.constant 0 : i32
    return %c0_i32, %c0_i32_0 : i32, i32
  }
  func.func @transform_4(%arg0: i32, %arg1: i32) -> (i32, i32) {
    %c0_i32 = arith.constant 0 : i32
    %c0_i32_0 = arith.constant 0 : i32
    %c0_i32_1 = arith.constant 0 : i32
    return %c0_i32, %c0_i32_0 : i32, i32
  }
  func.func @transform_5(%arg0: i32, %arg1: i32) -> (i32, i32) {
    %c0_i32 = arith.constant 0 : i32
    %c0_i32_0 = arith.constant 0 : i32
    return %arg0, %c0_i32 : i32, i32
  }
}

</mosaic_0001>

<bundles_post_ra>
// kernel: tpu_custom_call.1
= control target key start
LH: loop header
LB: loop body
LE: loop exit
PB: predicated region body
PF: predicated region fallthrough
CT: control target
= control target key end

     0   :  { %10 = vsyncpa [#allocation4], 0  ;;  %s4443_s0 = inlined_call_operand.hbm [shape: s32[1,1024], index: 0, kind: input, shape index: {}]   ;;  %s4444_s1 = inlined_call_operand.hbm [shape: bf16[1024,128], index: 1, kind: input, shape index: {}]   ;;  %s4445_s2 = inlined_call_operand.hbm [shape: f32[256,128], index: 2, kind: input, shape index: {}]   ;;  %s4446_s3 = inlined_call_operand.hbm [shape: f32[128,128], index: 3, kind: input, shape index: {}]   ;;  %s4447_s4 = inlined_call_operand.vmem [shape: f32[1,128], index: 4, kind: input, shape index: {}]   ;;  %s4448_s5 = inlined_call_operand.hbm [shape: f32[256,128], index: 5, kind: output, shape index: {}]  }
   0x1   :  { %12 = vsyncpa [#allocation4 + $0x1], 0 }
   0x2   :  { %13 = vsyncpa [#allocation7], 0 }
   0x3   :  { %15 = vsyncpa [#allocation7 + $0x1], 0 }
   0x4   :  { %16 = vsyncpa [#allocation10], 0 }
   0x5   :  { %17 = vsyncpa [#allocation5], 0  ;;  %s3161_s18 = smov 0   ;;  %s3163_s19 = smov 0  }
   0x6   :  { %s3165_s20 = smov 0   ;;  %s3167_s21 = smov 0  }
   0x7   :  { %s3169_s22 = smov 0   ;;  %s3171_s23 = smov 0  }
   0x8 LB: > { %s3190_s24 = sadd.s32 4294967295, %s3116_s23   ;;  %p55_p0 = scmp.ne.s32.totalorder %s3100_s19, %s3096_s18  ;;  %s3116_s23 = sphi %s3171_s23, %s23_s23   ;;  %s3112_s22 = sphi %s3169_s22, %s4676_s22   ;;  %s3108_s21 = sphi %s3167_s21, %s4675_s21   ;;  %s3104_s20 = sphi %s3165_s20, %s4674_s20   ;;  %s3100_s19 = sphi %s3163_s19, %s4673_s19   ;;  %s3096_s18 = sphi %s3161_s18, %s4672_s18  }
   0x9   : > { %p4449_p1 = scmp.eq.s32.totalorder %s3190_s24, 0  ;;  %p2068_p2 = scmp.ge.s32.totalorder %s3116_s23, 1 }
   0xa   : > { %p186_p3 = scmp.lt.s32.totalorder %s3116_s23, 3  ;;  %s3118_s27 = smov [#allocation8]  }
   0xb   : > { %p3198_p4 = por %p4449_p1, %p55_p0  ;;  %s201_s28 = sshll.u32 %s3118_s27, 4  ;;  %s202_s28 = int_to_ptr.vmem [resolvable:$true] %s201_s28 }
   0xc   : > { %p3202_p5 = pnand %p2068_p2, %p186_p3  ;;  %s3119_s30 = smov [#allocation9]  }
   0xd   : > { %s4452_s25 = scalar_select %p3198_p4, 1, 0 }
   0xe   : > { %s4453_s26 = scalar_select %p3202_p5, 1, 0 }
   0xf   : > { %p2796_p6 = pneg %p3202_p5  ;;  %s214_s6 = sshll.u32 %s3119_s30, 4  ;;  %s3214_s6 = int_to_ptr.vmem [resolvable:$true] %s214_s6 }
  0x10   : > { %s2908_s9 = scalar_lea.hbm %s4445_s2, 4096 }
  0x11   : > { %p3210_p7 = pnand %p2796_p6, %p4449_p1  ;;  %p2909_p8 = scmp.ne.s32.totalorder %s4445_s2, %s2908_s9 }
  0x12   : > { %p2915_p12 = scmp.lt.u32.totalorder %s2908_s9, %s4445_s2 }
  0x13   : > { %p2910_p9 = pneg %p3210_p7 }
  0x15   : > { %p2911_p10 = pnand %p2910_p9, %p2909_p8 }
  0x17   : > { %p2912_p11 = pneg %p2911_p10 }
  0x19   : > { %p2917_p13 = pnand %p2915_p12, %p2912_p11 }
  0x1b   : > { %2920 = shalt.err (!%p2917_p13)
}
  0x1c   : > { %s2921_s14 = scalar_lea.vmem %s202_s28, 4096  ;;  %p2929_p6 = scmp.lt.s32.totalorder %s202_s28, %s202_s28 }
  0x1d   : > { %p2922_p0 = scmp.ne.s32.totalorder %s202_s28, %s2921_s14  ;;  %p2930_p1 = scmp.lt.s32.totalorder %s2921_s14, %s2921_s14 }
  0x1f   : > { %p2924_p2 = pnand %p2922_p0, %p2910_p9  ;;  %p2931_p4 = por %p2930_p1, %p2929_p6 }
  0x21   : > { %p2925_p3 = pneg %p2924_p2 }
  0x23   : > { %p2932_p5 = pnand %p2931_p4, %p2925_p3 }
  0x25   : > { %2935 = shalt.err (!%p2932_p5)
}
  0x26   : > { %s3120_s15 = smov 128   ;;  %s3121_s16 = smov 8  }
  0x27   : > { %2799 = dma.hbm_to_vmem [thread:$0]  (!%p3210_p7), %s4445_s2, 4096, %s202_s28, [#allocation7], %s3120_s15, %s3120_s15, %s3121_s16  }
  0x28   : > { %s2936_s7 = scalar_lea.hbm %s4446_s3, 2048 }
  0x29   : > { %p2937_p8 = scmp.ne.s32.totalorder %s4446_s3, %s2936_s7  ;;  %p2943_p5 = scmp.lt.u32.totalorder %s2936_s7, %s4446_s3 }
  0x2b   : > { %p2939_p1 = pnand %p2937_p8, %p2910_p9 }
  0x2d   : > { %p2940_p4 = pneg %p2939_p1 }
  0x2f   : > { %p2945_p10 = pnand %p2943_p5, %p2940_p4 }
  0x31   : > { %2948 = shalt.err (!%p2945_p10)
}
  0x32   : > { %s2949_s28 = scalar_lea.vmem %s3214_s6, 2048  ;;  %p2957_p0 = scmp.lt.s32.totalorder %s3214_s6, %s3214_s6 }
  0x33   : > { %p2950_p11 = scmp.ne.s32.totalorder %s3214_s6, %s2949_s28  ;;  %p2958_p2 = scmp.lt.s32.totalorder %s2949_s28, %s2949_s28 }
  0x35   : > { %p2952_p12 = pnand %p2950_p11, %p2910_p9  ;;  %p2959_p3 = por %p2958_p2, %p2957_p0 }
  0x37   : > { %p2953_p13 = pneg %p2952_p12 }
  0x39   : > { %p2960_p6 = pnand %p2959_p3, %p2953_p13 }
  0x3b   : > { %2963 = shalt.err (!%p2960_p6)
}
  0x3c   : > { %2802 = dma.hbm_to_vmem [thread:$0]  (!%p3210_p7), %s4446_s3, 2048, %s3214_s6, [#allocation10], %s3120_s15, %s3120_s15, %s3121_s16  }
  0x3d   : > { %s32_s14 = sadd.s32 1, %s3112_s22  ;;  %s42_s17 = sadd.s32 1, %s3104_s20 }
  0x3e   : > { %p33_p9 = scmp.ge.s32.totalorder %s32_s14, 2  ;;  %p49_p8 = scmp.ne.s32.totalorder %s3104_s20, %s3100_s19 }
  0x3f   : > { %p50_p1 = scmp.eq.s32.totalorder %s3116_s23, 0  ;;  %p2812_p4 = scmp.lt.s32.totalorder %s3116_s23, 2 }
  0x40   : > { %s4678_s14 = smov (%p33_p9, %s32_s14), 0  ;;  %s3272_s29 = sand.u32 1, %s3104_s20  }
  0x41   : > { %p51_p5 = por %p50_p1, %p49_p8  ;;  %s39_s18 = ssub.s32 %s3112_s22, %s4678_s14 }
  0x42   : > { %p40_p10 = scmp.eq.s32.totalorder %s39_s18, 0  ;;  %s2072_s6 = sshll.u32 %s3272_s29, 2 }
  0x43   : > { %s2378_s15 = sshll.u32 %s3112_s22, 6  ;;  %s235_s8 = scalar_lea.vmem [#allocation3], %s2072_s6 }
  0x44   : > { %s3279_s16 = scalar_select %p40_p10, %s3104_s20, %s42_s17  }
  0x45   : > { %s3284_s7 = scalar_lea.hbm %s4443_s0, %s2378_s15  ;;  %s243_s9 = sshll.u32 %s235_s8, 4  ;;  %s3286_s9 = int_to_ptr.vmem [resolvable:$true] %s243_s9 }
  0x46   : > { %p3290_p7 = pnand %p2812_p4, %p51_p5  ;;  %s2075_s11 = sshll.u32 %s3272_s29, 8 }
  0x47   : > { %s2379_s28 = sshll.u32 %s3112_s22, 12  ;;  %s232_s12 = scalar_lea.sflag [#allocation4], %s3272_s29 }
  0x48   : > { %s2964_s13 = scalar_lea.hbm %s3284_s7, 64  ;;  %p2966_p12 = pneg %p3290_p7 }
  0x49   : > { %p2965_p11 = scmp.ne.s32.totalorder %s3284_s7, %s2964_s13  ;;  %s2969_s6 = scalar_lea.hbm %s4443_s0, 128 }
  0x4a   : > { %p2970_p2 = scmp.lt.u32.totalorder %s3284_s7, %s4443_s0  ;;  %p2971_p3 = scmp.lt.u32.totalorder %s2969_s6, %s2964_s13 }
  0x4b   : > { %p2967_p13 = pnand %p2966_p12, %p2965_p11  ;;  %p2973_p9 = scmp.lt.u32.totalorder %s2964_s13, %s3284_s7 }
  0x4c   : > { %p2972_p6 = por %p2971_p3, %p2970_p2 }
  0x4d   : > { %p2968_p0 = pneg %p2967_p13 }
  0x4e   : > { %p2974_p8 = por %p2973_p9, %p2972_p6 }
  0x50   : > { %p2975_p1 = pnand %p2974_p8, %p2968_p0 }
  0x52   : > { %2978 = shalt.err (!%p2975_p1)
}
  0x53   : > { %s2979_s30 = scalar_lea.vmem %s3286_s9, 64  ;;  %s3122_s8 = smov [#allocation3]  }
  0x54   : > { %p2980_p4 = scmp.ne.s32.totalorder %s3286_s9, %s2979_s30  ;;  %s2984_s17 = sshll.u32 %s3122_s8, 4  ;;  %s2985_s17 = int_to_ptr.vmem [resolvable:$false] %s2984_s17 }
  0x55   : > { %s2986_s18 = scalar_lea.vmem %s2985_s17, 128  ;;  %p2987_p11 = scmp.lt.s32.totalorder %s3286_s9, %s2985_s17 }
  0x56   : > { %p2982_p5 = pnand %p2980_p4, %p2966_p12  ;;  %p2988_p13 = scmp.lt.s32.totalorder %s2986_s18, %s2979_s30 }
  0x58   : > { %p2983_p10 = pneg %p2982_p5  ;;  %p2989_p2 = por %p2988_p13, %p2987_p11 }
  0x5a   : > { %p2990_p3 = pnand %p2989_p2, %p2983_p10 }
  0x5c   : > { %2993 = shalt.err (!%p2990_p3)
}
  0x5d   : > { %2806 = dma.hbm_to_vmem [thread:$0]  (!%p3290_p7), %s3284_s7, 64, %s3286_s9, %s232_s12  }
  0x5e   : > { %s254_s13 = scalar_lea.vmem [#allocation6], %s2075_s11  ;;  %s250_s15 = sand.u32 1, %s3116_s23  }
  0x5f   : > { %s261_s6 = sshll.u32 %s254_s13, 4  ;;  %s3332_s8 = scalar_lea.hbm %s4444_s1, %s2379_s28  ;;  %s3325_s6 = int_to_ptr.vmem [resolvable:$true] %s261_s6 }
  0x60   : > { %s3334_s17 = scalar_lea.sflag [#allocation7], %s250_s15  ;;  %s2994_s18 = scalar_lea.hbm %s3332_s8, 4096 }
  0x61   : > { %p2995_p0 = scmp.ne.s32.totalorder %s3332_s8, %s2994_s18  ;;  %s2999_s9 = scalar_lea.hbm %s4444_s1, 8192 }
  0x62   : > { %p3000_p8 = scmp.lt.u32.totalorder %s3332_s8, %s4444_s1  ;;  %p3001_p1 = scmp.lt.u32.totalorder %s2999_s9, %s2994_s18 }
  0x63   : > { %p2997_p6 = pnand %p2995_p0, %p2966_p12  ;;  %p3003_p5 = scmp.lt.u32.totalorder %s2994_s18, %s3332_s8 }
  0x64   : > { %p3002_p4 = por %p3001_p1, %p3000_p8 }
  0x65   : > { %p2998_p9 = pneg %p2997_p6 }
  0x66   : > { %p3004_p10 = por %p3003_p5, %p3002_p4 }
  0x68   : > { %p3005_p11 = pnand %p3004_p10, %p2998_p9 }
  0x6a   : > { %3008 = shalt.err (!%p3005_p11)
}
  0x6b   : > { %s3009_s28 = scalar_lea.vmem %s3325_s6, 4096  ;;  %s3123_s13 = smov [#allocation6]  }
  0x6c   : > { %p3010_p13 = scmp.ne.s32.totalorder %s3325_s6, %s3009_s28  ;;  %s3014_s15 = sshll.u32 %s3123_s13, 4  ;;  %s3015_s15 = int_to_ptr.vmem [resolvable:$false] %s3014_s15 }
  0x6d   : > { %s3016_s27 = scalar_lea.vmem %s3015_s15, 8192  ;;  %p3017_p0 = scmp.lt.s32.totalorder %s3325_s6, %s3015_s15 }
  0x6e   : > { %p3012_p2 = pnand %p3010_p13, %p2966_p12  ;;  %p3018_p6 = scmp.lt.s32.totalorder %s3016_s27, %s3009_s28 }
  0x70   : > { %p3013_p3 = pneg %p3012_p2  ;;  %p3019_p8 = por %p3018_p6, %p3017_p0 }
  0x72   : > { %p3020_p1 = pnand %p3019_p8, %p3013_p3 }
  0x74   : > { %3023 = shalt.err (!%p3020_p1)
}
  0x75   : > { %s3124_s30 = smov 64   ;;  %s3125_s18 = smov 4  }
  0x76   : > { %2809 = dma.hbm_to_vmem [thread:$0]  (!%p3290_p7), %s3332_s8, 4096, %s3325_s6, %s3334_s17, %s3124_s30, %s3124_s30, %s3125_s18  }
  0x77   : > { %p4456_p12 = scmp.ne.s32.totalorder %s4453_s26, 0 }
  0x78   : > { %s275_s29 = sand.u32 (!%p4456_p12), 1, %s3100_s19   ;;  %p4457_p9 = scmp.ne.s32.totalorder (!%p4456_p12), %s4452_s25, 0 }
  0x79   : > { %273 = sbr.rel (%p4456_p12) target bundleno = 817 (0x331), region = 40  ;;  %s2079_s7 = sshll.u32 (!%p4456_p12), %s275_s29, 2 }
  0x7a   : > { %s276_s9 = scalar_lea.sflag (!%p4456_p12), [#allocation4], %s275_s29  ;;  %s3363_s11 = scalar_lea.vmem (!%p4456_p12), [#allocation3], %s2079_s7 }
  0x80   : > { %3075 = dma.done.wait (%p4457_p9), %s276_s9, 64  }
  0x81   : > { %3077 = vsyncadd (%p4457_p9), %s276_s9, 4294967232  ;;  %s284_s12 = sand.u32 1, %s3190_s24   ;;  %s2080_s10 = sshll.u32 %s275_s29, 8 }
  0x82   : > { %s285_s6 = scalar_lea.sflag [#allocation7], %s284_s12  ;;  %s3370_s8 = scalar_lea.vmem [#allocation6], %s2080_s10 }
  0x83   : > { %3079 = dma.done.wait (%p4457_p9), %s285_s6, 4096  }
  0x84   : > { %3081 = vsyncadd (%p4457_p9), %s285_s6, 4294963200  ;;  %p4458_p7 = scmp.eq.s32.totalorder %s3190_s24, 0 }
  0x86   : > { %3083 = dma.done.wait (%p4458_p7), [#allocation7], 4096   ;;  %p4459_p4 = pmov %p4458_p7 }
  0x88   : > { %3085 = vsyncadd (%p4459_p4), [#allocation7], 4294963200  ;;  %p4460_p5 = pmov %p4459_p4 }
  0x89   : > { %p4461_p10 = pmov %p4459_p4 }
  0x8a   : > { %3087 = dma.done.wait (%p4460_p5), [#allocation10], 2048  }
  0x8b   : > { %3089 = vsyncadd (%p4461_p10), [#allocation10], 4294965248  ;;  %p2083_p11 = scmp.ne.s32.totalorder %s3108_s21, 0 }
  0x8c   : > { %v3126_v0 = vmov (!%p2083_p11), 0.0  }
  0x8d   : > { %331 = sbr.rel (%p2083_p11) target bundleno = 157 (0x9d), region = 60  ;;  %332 = vst [vmem:[#allocation2] sm:$0xff] (!%p2083_p11), %v3126_v0  ;;  %333 = vst [vmem:[#allocation2 + $0x8] sm:$0xff] (!%p2083_p11), %v3126_v0 }
  0x8e   : > { %334 = vst [vmem:[#allocation2 + $0x10] sm:$0xff] (!%p2083_p11), %v3126_v0  ;;  %335 = vst [vmem:[#allocation2 + $0x18] sm:$0xff] (!%p2083_p11), %v3126_v0 }
  0x8f   : > { %336 = vst [vmem:[#allocation2 + $0x20] sm:$0xff] (!%p2083_p11), %v3126_v0  ;;  %337 = vst [vmem:[#allocation2 + $0x28] sm:$0xff] (!%p2083_p11), %v3126_v0 }
  0x90   : > { %338 = vst [vmem:[#allocation2 + $0x30] sm:$0xff] (!%p2083_p11), %v3126_v0  ;;  %339 = vst [vmem:[#allocation2 + $0x38] sm:$0xff] (!%p2083_p11), %v3126_v0 }
  0x91   : > { %340 = vst [vmem:[#allocation2 + $0x40] sm:$0xff] (!%p2083_p11), %v3126_v0  ;;  %341 = vst [vmem:[#allocation2 + $0x48] sm:$0xff] (!%p2083_p11), %v3126_v0 }
  0x92   : > { %342 = vst [vmem:[#allocation2 + $0x50] sm:$0xff] (!%p2083_p11), %v3126_v0  ;;  %343 = vst [vmem:[#allocation2 + $0x58] sm:$0xff] (!%p2083_p11), %v3126_v0 }
  0x93   : > { %344 = vst [vmem:[#allocation2 + $0x60] sm:$0xff] (!%p2083_p11), %v3126_v0  ;;  %345 = vst [vmem:[#allocation2 + $0x68] sm:$0xff] (!%p2083_p11), %v3126_v0 }
  0x94   : > { %346 = vst [vmem:[#allocation2 + $0x70] sm:$0xff] %v3126_v0  ;;  %347 = vst [vmem:[#allocation2 + $0x78] sm:$0xff] %v3126_v0 }
  0x95   : > { %348 = vst [vmem:[#allocation2 + $0x80] sm:$0xff] %v3126_v0  ;;  %349 = vst [vmem:[#allocation2 + $0x88] sm:$0xff] %v3126_v0 }
  0x96   : > { %350 = vst [vmem:[#allocation2 + $0x90] sm:$0xff] %v3126_v0  ;;  %351 = vst [vmem:[#allocation2 + $0x98] sm:$0xff] %v3126_v0 }
  0x97   : > { %352 = vst [vmem:[#allocation2 + $0xa0] sm:$0xff] %v3126_v0  ;;  %353 = vst [vmem:[#allocation2 + $0xa8] sm:$0xff] %v3126_v0 }
  0x98   : > { %354 = vst [vmem:[#allocation2 + $0xb0] sm:$0xff] %v3126_v0  ;;  %355 = vst [vmem:[#allocation2 + $0xb8] sm:$0xff] %v3126_v0 }
  0x99   : > { %356 = vst [vmem:[#allocation2 + $0xc0] sm:$0xff] %v3126_v0  ;;  %357 = vst [vmem:[#allocation2 + $0xc8] sm:$0xff] %v3126_v0 }
  0x9a   : > { %358 = vst [vmem:[#allocation2 + $0xd0] sm:$0xff] %v3126_v0  ;;  %359 = vst [vmem:[#allocation2 + $0xd8] sm:$0xff] %v3126_v0 }
  0x9b   : > { %360 = vst [vmem:[#allocation2 + $0xe0] sm:$0xff] %v3126_v0  ;;  %361 = vst [vmem:[#allocation2 + $0xe8] sm:$0xff] %v3126_v0 }
  0x9c   : > { %362 = vst [vmem:[#allocation2 + $0xf0] sm:$0xff] %v3126_v0  ;;  %363 = vst [vmem:[#allocation2 + $0xf8] sm:$0xff] %v3126_v0 }
  0x9d PF: > { %v2876_v1 = vld [vmem:[%s3370_s8 + $0x40] sm:$0xff]   ;;  %v2880_v5 = vld [vmem:[%s3370_s8 + $0x48] sm:$0xff]   ;;  %v2884_v9 = vld [vmem:[%s3370_s8 + $0x50] sm:$0xff]   ;;  %v365_v20 = vlaneseq  ;;  %v3127_v47 = vmov 1.0|1.0   ;;  %v4564_v50 = vmov 0 }
  0x9e   : > { %v2877_v2 = vld [vmem:[%s3370_s8 + $0xc0] sm:$0xff]   ;;  %2380 = vmatprep.subr.bf16.mxu0 %v2876_v1  ;;  %v2881_v6 = vld [vmem:[%s3370_s8 + $0xc8] sm:$0xff]   ;;  %v2885_v10 = vld [vmem:[%s3370_s8 + $0xd0] sm:$0xff]   ;;  %v4608_v62 = vmov 0  ;;  %p2372_p13 = scmp.ne.s32.totalorder %s3108_s21, 1 }
  0x9f   : > { %v2878_v3 = vld [vmem:[%s3370_s8] sm:$0xff]   ;;  %2492 = vmatprep.subr.bf16.mxu1 %v2877_v2  ;;  %v2882_v7 = vld [vmem:[%s3370_s8 + $0x8] sm:$0xff]   ;;  %v2886_v11 = vld [vmem:[%s3370_s8 + $0x10] sm:$0xff]   ;;  %v3408_v25 = vshrl.u32 %v365_v20, 7 }
  0xa0   : > { %v2879_v4 = vld [vmem:[%s3370_s8 + $0x80] sm:$0xff]   ;;  %2381 = vmatpush3.bf16.msra.mxu0 %v2878_v3  ;;  %v2883_v8 = vld [vmem:[%s3370_s8 + $0x88] sm:$0xff]   ;;  %v2887_v12 = vld [vmem:[%s3370_s8 + $0x90] sm:$0xff]  }
  0xa1   : > { %2493 = vmatpush3.bf16.msra.mxu1 %v2879_v4  ;;  %2382 = vmatprep.subr.bf16.mxu0 %v2880_v5  ;;  %v2888_v13 = vld [vmem:[%s3370_s8 + $0x58] sm:$0xff]   ;;  %v2892_v17 = vld [vmem:[%s3370_s8 + $0x60] sm:$0xff]   ;;  %v2896_v22 = vld [vmem:[%s3370_s8 + $0x68] sm:$0xff]   ;;  %v438_v30 = vsub.s32 1, %v3408_v25  ;;  %v446_v32 = vsub.s32 3, %v3408_v25  ;;  %v434_v34 = vsub.s32 0, %v3408_v25 }
  0xa2   : > { %2494 = vmatprep.subr.bf16.mxu1 %v2881_v6  ;;  %v2889_v14 = vld [vmem:[%s3370_s8 + $0xd8] sm:$0xff]   ;;  %v2893_v18 = vld [vmem:[%s3370_s8 + $0xe0] sm:$0xff]   ;;  %v2897_v23 = vld [vmem:[%s3370_s8 + $0xe8] sm:$0xff]   ;;  %v442_v36 = vsub.s32 2, %v3408_v25  ;;  %v367_v39 = vadd.s32 8, %v3408_v25  ;;  %v368_v41 = vadd.s32 16, %v3408_v25 }
  0xa3   : > { %v2890_v15 = vld [vmem:[%s3370_s8 + $0x18] sm:$0xff]   ;;  %v2894_v19 = vld [vmem:[%s3370_s8 + $0x20] sm:$0xff]   ;;  %v2898_v24 = vld [vmem:[%s3370_s8 + $0x28] sm:$0xff]   ;;  %v369_v42 = vadd.s32 24, %v3408_v25  ;;  %v370_v48 = vadd.s32 32, %v3408_v25  ;;  %v371_v49 = vadd.s32 40, %v3408_v25 }
  0xa4   : > { %2383 = vmatpush3.bf16.msra.mxu0 %v2882_v7  ;;  %v2891_v16 = vld [vmem:[%s3370_s8 + $0x98] sm:$0xff]   ;;  %v2895_v21 = vld [vmem:[%s3370_s8 + $0xa0] sm:$0xff]   ;;  %v2899_v26 = vld [vmem:[%s3370_s8 + $0xa8] sm:$0xff]   ;;  %v3472_v51 = vadd.s32 48, %v3408_v25  ;;  %v3479_v53 = vadd.s32 56, %v3408_v25  ;;  %v3482_v54 = vadd.s32 64, %v3408_v25 }
  0xa5   : > { %2495 = vmatpush3.bf16.msra.mxu1 %v2883_v8  ;;  %2384 = vmatprep.subr.bf16.mxu0 %v2884_v9  ;;  %v2900_v27 = vld [vmem:[%s3370_s8 + $0x70] sm:$0xff]   ;;  %v2904_v33 = vld [vmem:[%s3370_s8 + $0x78] sm:$0xff]   ;;  %v3485_v55 = vadd.s32 72, %v3408_v25  ;;  %v3488_v56 = vadd.s32 80, %v3408_v25  ;;  %v3495_v58 = vadd.s32 88, %v3408_v25  ;;  %v3498_v59 = vadd.s32 96, %v3408_v25 }
  0xa6   : > { %2496 = vmatprep.subr.bf16.mxu1 %v2885_v10  ;;  %v2901_v28 = vld [vmem:[%s3370_s8 + $0xf0] sm:$0xff]   ;;  %v2905_v35 = vld [vmem:[%s3370_s8 + $0xf8] sm:$0xff]   ;;  %v3501_v60 = vadd.s32 104, %v3408_v25  ;;  %v3504_v61 = vadd.s32 144, %v3408_v25  ;;  %v3511_v63 = vadd.s32 152, %v3408_v25  ;;  %v3514_v0 = vadd.s32 160, %v3408_v25 }
  0xa7   : > { %v2902_v29 = vld [vmem:[%s3370_s8 + $0x30] sm:$0xff]   ;;  %v2906_v37 = vld [vmem:[%s3370_s8 + $0x38] sm:$0xff]   ;;  %v3517_v1 = vadd.s32 168, %v3408_v25  ;;  %v3520_v2 = vadd.s32 176, %v3408_v25  ;;  %v3526_v3 = vadd.s32 184, %v3408_v25  ;;  %v3529_v4 = vadd.s32 192, %v3408_v25 }
  0xa8   : > { %2385 = vmatpush3.bf16.msra.mxu0 %v2886_v11  ;;  %v2903_v31 = vld [vmem:[%s3370_s8 + $0xb0] sm:$0xff]   ;;  %v2907_v38 = vld [vmem:[%s3370_s8 + $0xb8] sm:$0xff]   ;;  %v3532_v5 = vadd.s32 200, %v3408_v25  ;;  %v3535_v6 = vadd.s32 208, %v3408_v25  ;;  %v3546_v7 = vadd.s32 216, %v3408_v25  ;;  %v3549_v8 = vadd.s32 224, %v3408_v25 }
  0xa9   : > { %2497 = vmatpush3.bf16.msra.mxu1 %v2887_v12  ;;  %2386 = vmatprep.subr.bf16.mxu0 %v2888_v13  ;;  %v364_v40 = vld [vmem:[%s3363_s11] sm:$0xf]  ;;  %v3557_v9 = vadd.s32 232, %v3408_v25  ;;  %v3560_v10 = vadd.s32 240, %v3408_v25 }
  0xaa   : > { %2498 = vmatprep.subr.bf16.mxu1 %v2889_v14  ;;  %v3427_v43 = vrot.slane %v364_v40, %v438_v30  ;;  %v3429_v44 = vrot.slane %v364_v40, %v446_v32  ;;  %v3431_v45 = vrot.slane %v364_v40, %v434_v34  ;;  %v3433_v46 = vrot.slane %v364_v40, %v442_v36  ;;  %v896_v14 = vld [vmem:[#allocation2] sm:$0xff] }
  0xab   : > { %v4512_v30 = vmov 0  ;;  %v4520_v32 = vmov 0  ;;  %v4528_v34 = vmov 0  ;;  %v4534_v36 = vmov 0 }
  0xac   : > { %2387 = vmatpush3.bf16.msra.mxu0 %v2890_v15  ;;  %vm449_vm0 = vcmp.eq.s32.totalorder %v3427_v43, %v3408_v25  ;;  %vm453_vm1 = vcmp.eq.s32.totalorder %v3427_v43, %v367_v39  ;;  %vm451_vm2 = vcmp.eq.s32.totalorder %v3429_v44, %v3408_v25  ;;  %vm455_vm3 = vcmp.eq.s32.totalorder %v3429_v44, %v367_v39 }
  0xad   : > { %2499 = vmatpush3.bf16.msra.mxu1 %v2891_v16  ;;  %2388 = vmatprep.subr.bf16.mxu0 %v2892_v17  ;;  %vm2244_vm4 = vmpackc.low %vm453_vm1, %vm449_vm0  ;;  %vm448_vm5 = vcmp.eq.s32.totalorder %v3431_v45, %v3408_v25  ;;  %vm452_vm6 = vcmp.eq.s32.totalorder %v3431_v45, %v367_v39  ;;  %vm450_vm7 = vcmp.eq.s32.totalorder %v3433_v46, %v3408_v25  ;;  %v3662_v15 = vadd.s32 248, %v3408_v25 }
  0xae   : > { %2500 = vmatprep.subr.bf16.mxu1 %v2893_v18  ;;  %vm454_vm8 = vcmp.eq.s32.totalorder %v3433_v46, %v367_v39  ;;  %2245 = vmatprep.mubr.msk.bf16.mxu0 %vm2244_vm4, %v3127_v47  ;;  %vm2308_vm9 = vmpackc.low %vm455_vm3, %vm451_vm2  ;;  %vm457_vm10 = vcmp.eq.s32.totalorder %v3427_v43, %v368_v41  ;;  %vm461_vm11 = vcmp.eq.s32.totalorder %v3427_v43, %v369_v42  ;;  %v4542_v39 = vmov 0 }
  0xaf   : > { %2309 = vmatprep.mubr.msk.bf16.mxu1 %vm2308_vm9, %v3127_v47  ;;  %vm2246_vm12 = vmpackc.low %vm452_vm6, %vm448_vm5  ;;  %vm459_vm13 = vcmp.eq.s32.totalorder %v3429_v44, %v368_v41  ;;  %vm463_vm14 = vcmp.eq.s32.totalorder %v3429_v44, %v369_v42  ;;  %vm456_vm1 = vcmp.eq.s32.totalorder %v3431_v45, %v368_v41  ;;  %vm460_vm2 = vcmp.eq.s32.totalorder %v3431_v45, %v369_v42 }
  0xb0   : > { %2389 = vmatpush3.bf16.msra.mxu0 %v2894_v19  ;;  %vm2310_vm15 = vmpackc.low %vm454_vm8, %vm450_vm7  ;;  %vm458_vm4 = vcmp.eq.s32.totalorder %v3433_v46, %v368_v41  ;;  %vm462_vm5 = vcmp.eq.s32.totalorder %v3433_v46, %v369_v42  ;;  %vm465_vm6 = vcmp.eq.s32.totalorder %v3427_v43, %v370_v48  ;;  %vm469_vm7 = vcmp.eq.s32.totalorder %v3427_v43, %v371_v49  ;;  %v897_v19 = vld [vmem:[#allocation2 + $0x8] sm:$0xff] }
  0xb1   : > { %2501 = vmatpush3.bf16.msra.mxu1 %v2895_v21  ;;  %2390 = vmatprep.subr.bf16.mxu0 %v2896_v22  ;;  %vm2248_vm0 = vmpackc.low %vm461_vm11, %vm457_vm10  ;;  %vm467_vm9 = vcmp.eq.s32.totalorder %v3429_v44, %v370_v48  ;;  %vm471_vm10 = vcmp.eq.s32.totalorder %v3429_v44, %v371_v49  ;;  %v4544_v40 = vmov 0  ;;  %v382_v41 = vadd.s32 128, %v3408_v25 }
  0xb2   : > { %2502 = vmatprep.subr.bf16.mxu1 %v2897_v23  ;;  %vm2312_vm3 = vmpackc.low %vm463_vm14, %vm459_vm13  ;;  %vm464_vm14 = vcmp.eq.s32.totalorder %v3431_v45, %v370_v48  ;;  %v383_v42 = vadd.s32 136, %v3408_v25 }
  0xb3   : > { %vm3465_vm8 = vmpackc.low %vm460_vm2, %vm456_vm1  ;;  %vm470_vm1 = vcmp.eq.s32.totalorder %v3433_v46, %v371_v49  ;;  %vm473_vm2 = vcmp.eq.s32.totalorder %v3427_v43, %v3472_v51 }
  0xb4   : > { %2391 = vmatpush3.bf16.msra.mxu0 %v2898_v24  ;;  %vm3474_vm11 = vmpackc.low %vm462_vm5, %vm458_vm4  ;;  %vm475_vm4 = vcmp.eq.s32.totalorder %v3429_v44, %v3472_v51  ;;  %vm479_vm5 = vcmp.eq.s32.totalorder %v3429_v44, %v3479_v53  ;;  %v4503_v24 = vmov 0 }
  0xb5   : > { %2503 = vmatpush3.bf16.msra.mxu1 %v2899_v26  ;;  %2392 = vmatprep.subr.bf16.mxu0 %v2900_v27  ;;  %vm3506_vm13 = vmpackc.low %vm471_vm10, %vm467_vm9  ;;  %vm478_vm10 = vcmp.eq.s32.totalorder %v3433_v46, %v3479_v53  ;;  %v4507_v26 = vmov 0  ;;  %v4510_v27 = vmov 0 }
  0xb6   : > { %2504 = vmatprep.subr.bf16.mxu1 %v2901_v28  ;;  %v380_v28 = vadd.s32 112, %v3408_v25 }
  0xb8   : > { %2393 = vmatpush3.bf16.msra.mxu0 %v2902_v29  ;;  %v381_v29 = vadd.s32 120, %v3408_v25  ;;  %v4553_v25 = vmov 0 }
  0xb9   : > { %2505 = vmatpush3.bf16.msra.mxu1 %v2903_v31  ;;  %2394 = vmatprep.subr.bf16.mxu0 %v2904_v33  ;;  %v4516_v31 = vmov 0  ;;  %v4524_v33 = vmov 0 }
  0xba   : > { %2506 = vmatprep.subr.bf16.mxu1 %v2905_v35  ;;  %v4530_v35 = vmov 0 }
  0xbc   : > { %2395 = vmatpush3.bf16.msra.mxu0 %v2906_v37  ;;  %v4536_v37 = vmov 0 }
  0xbd   : > { %2507 = vmatpush3.bf16.msra.mxu1 %v2907_v38  ;;  %v4538_v38 = vmov 0 }
  0xbf   : > { %2247 = vmatmul.mubr.msk.bf16.vlgmr.msra.gmra.mrb[0].mxu0 %vm2246_vm12, %v3127_v47  ;;  %vm3490_vm12 = vmpackc.low %vm469_vm7, %vm465_vm6  ;;  %vm472_vm7 = vcmp.eq.s32.totalorder %v3431_v45, %v3472_v51 }
  0xc0   : > { %2311 = vmatmul.mubr.msk.bf16.vlgmr.msra.gmra.mrb[0].mxu1 %vm2310_vm15, %v3127_v47  ;;  %2249 = vmatprep.mubr.msk.bf16.mxu0 %vm2248_vm0, %v3127_v47  ;;  %vm468_vm15 = vcmp.eq.s32.totalorder %v3431_v45, %v371_v49  ;;  %vm466_vm0 = vcmp.eq.s32.totalorder %v3433_v46, %v370_v48  ;;  %v4548_v48 = vmov 0  ;;  %v4559_v49 = vmov 0 }
  0xc1   : > { %2313 = vmatprep.mubr.msk.bf16.mxu1 %vm2312_vm3, %v3127_v47  ;;  %vm477_vm3 = vcmp.eq.s32.totalorder %v3427_v43, %v3479_v53  ;;  %vm3570_vm6 = vmpackc.low %vm468_vm15, %vm464_vm14  ;;  %vm487_vm15 = vcmp.eq.s32.totalorder %v3429_v44, %v3485_v55 }
  0xc2   : > { %vm3594_vm9 = vmpackc.low %vm477_vm3, %vm473_vm2  ;;  %vm482_vm3 = vcmp.eq.s32.totalorder %v3433_v46, %v3482_v54 }
  0xc3   : > { %vm3614_vm2 = vmpackc.low %vm479_vm5, %vm475_vm4  ;;  %vm489_vm5 = vcmp.eq.s32.totalorder %v3427_v43, %v3488_v56  ;;  %vm499_vm4 = vcmp.eq.s32.totalorder %v3429_v44, %v3498_v59 }
  0xc7   : > { %2251 = vmatmul.mubr.msk.bf16.gmra.mrb[4].mxu0 %vm3465_vm8, %v3127_v47  ;;  %vm476_vm8 = vcmp.eq.s32.totalorder %v3431_v45, %v3479_v53 }
  0xc8   : > { %2315 = vmatmul.mubr.msk.bf16.gmra.mrb[4].mxu1 %vm3474_vm11, %v3127_v47  ;;  %2253 = vmatprep.mubr.msk.bf16.mxu0 %vm3490_vm12, %v3127_v47  ;;  %vm3582_vm11 = vmpackc.low %vm470_vm1, %vm466_vm0  ;;  %vm480_vm0 = vcmp.eq.s32.totalorder %v3431_v45, %v3482_v54  ;;  %vm493_vm12 = vcmp.eq.s32.totalorder %v3427_v43, %v3495_v58  ;;  %vm4523_vm1 = vcmp.eq.s32.totalorder %v3431_v45, %v3511_v63 }
  0xc9   : > { %2317 = vmatprep.mubr.msk.bf16.mxu1 %vm3506_vm13, %v3127_v47  ;;  %vm3697_vm14 = vmpackc.low %vm476_vm8, %vm472_vm7  ;;  %vm4480_vm7 = vcmp.eq.s32.totalorder %v3433_v46, %v3472_v51  ;;  %vm4522_vm13 = vcmp.eq.s32.totalorder %v3431_v45, %v3504_v61  ;;  %v4568_v51 = vmov 0 }
  0xca   : > { %vm3717_vm8 = vmpackc.low %vm478_vm10, %vm4480_vm7  ;;  %vm4484_vm10 = vcmp.eq.s32.totalorder %v3427_v43, %v3485_v55 }
  0xcf   : > { %2255 = vmatmul.mubr.msk.bf16.gmra.mrb[8].mxu0 %vm3570_vm6, %v3127_v47  ;;  %vm491_vm6 = vcmp.eq.s32.totalorder %v3429_v44, %v3488_v56 }
  0xd0   : > { %2319 = vmatmul.mubr.msk.bf16.gmra.mrb[8].mxu1 %vm3582_vm11, %v3127_v47  ;;  %2257 = vmatprep.mubr.msk.bf16.mxu0 %vm3594_vm9, %v3127_v47  ;;  %vm4483_vm11 = vcmp.eq.s32.totalorder %v3427_v43, %v3482_v54 }
  0xd1   : > { %2321 = vmatprep.mubr.msk.bf16.mxu1 %vm3614_vm2, %v3127_v47  ;;  %vm3735_vm7 = vmpackc.low %vm4484_vm10, %vm4483_vm11  ;;  %vm4487_vm2 = vcmp.eq.s32.totalorder %v3429_v44, %v3482_v54  ;;  %vm503_vm10 = vcmp.eq.s32.totalorder %v3429_v44, %v3501_v60  ;;  %v900_v54 = vld [vmem:[#allocation2 + $0x20] sm:$0xff] }
  0xd2   : > { %vm3753_vm11 = vmpackc.low %vm487_vm15, %vm4487_vm2 }
  0xd3   : > { %vm3891_vm9 = vmpackc.low %vm503_vm10, %vm499_vm4  ;;  %vm496_vm4 = vcmp.eq.s32.totalorder %v3431_v45, %v3498_v59  ;;  %vm500_vm10 = vcmp.eq.s32.totalorder %v3431_v45, %v3501_v60 }
  0xd4   : > { %v4513_v30 = vsel %vm3891_vm9, 4294967295, %v4512_v30  ;;  %vm4527_vm9 = vcmp.eq.s32.totalorder %v3433_v46, %v3511_v63 }
  0xd7   : > { %2259 = vmatmul.mubr.msk.bf16.gmra.mrb[12].mxu0 %vm3697_vm14, %v3127_v47  ;;  %vm4490_vm14 = vcmp.eq.s32.totalorder %v3431_v45, %v3485_v55 }
  0xd8   : > { %2323 = vmatmul.mubr.msk.bf16.gmra.mrb[12].mxu1 %vm3717_vm8, %v3127_v47  ;;  %2261 = vmatprep.mubr.msk.bf16.mxu0 %vm3735_vm7, %v3127_v47  ;;  %vm3788_vm2 = vmpackc.low %vm4490_vm14, %vm480_vm0  ;;  %vm4493_vm0 = vcmp.eq.s32.totalorder %v3433_v46, %v3485_v55  ;;  %vm4501_vm14 = vcmp.eq.s32.totalorder %v3431_v45, %v3488_v56  ;;  %vm4505_vm8 = vcmp.eq.s32.totalorder %v3433_v46, %v3488_v56 }
  0xd9   : > { %2325 = vmatprep.mubr.msk.bf16.mxu1 %vm3753_vm11, %v3127_v47  ;;  %vm3807_vm7 = vmpackc.low %vm4493_vm0, %vm482_vm3  ;;  %vm501_vm0 = vcmp.eq.s32.totalorder %v3427_v43, %v3501_v60  ;;  %vm4506_vm11 = vcmp.eq.s32.totalorder %v3433_v46, %v3495_v58 }
  0xda   : > { %vm3825_vm3 = vmpackc.low %vm493_vm12, %vm489_vm5  ;;  %vm4498_vm12 = vcmp.eq.s32.totalorder %v3429_v44, %v3495_v58 }
  0xdb   : > { %vm3843_vm5 = vmpackc.low %vm4498_vm12, %vm491_vm6  ;;  %vm4502_vm6 = vcmp.eq.s32.totalorder %v3431_v45, %v3495_v58 }
  0xdc   : > { %vm3861_vm12 = vmpackc.low %vm4502_vm6, %vm4501_vm14  ;;  %vm4509_vm14 = vcmp.eq.s32.totalorder %v3427_v43, %v3498_v59 }
  0xdd   : > { %v4504_v24 = vsel %vm3861_vm12, 4294967295, %v4503_v24  ;;  %vm3875_vm15 = vmpackc.low %vm4506_vm11, %vm4505_vm8  ;;  %vm4514_vm8 = vcmp.eq.s32.totalorder %v3427_v43, %v3504_v61  ;;  %vm4515_vm11 = vcmp.eq.s32.totalorder %v3427_v43, %v3511_v63 }
  0xde   : > { %v4508_v26 = vsel %vm3875_vm15, 4294967295, %v4507_v26  ;;  %vm3882_vm6 = vmpackc.low %vm501_vm0, %vm4509_vm14  ;;  %vm498_vm14 = vcmp.eq.s32.totalorder %v3433_v46, %v3498_v59  ;;  %v901_v59 = vld [vmem:[#allocation2 + $0x28] sm:$0xff] }
  0xdf   : > { %v4511_v27 = vsel %vm3882_vm6, 4294967295, %v4510_v27  ;;  %2263 = vmatmul.mubr.msk.bf16.gmra.mrb[16].mxu0 %vm3788_vm2, %v3127_v47  ;;  %vm3907_vm0 = vmpackc.low %vm4515_vm11, %vm4514_vm8  ;;  %vm4518_vm2 = vcmp.eq.s32.totalorder %v3429_v44, %v3504_v61  ;;  %vm505_vm8 = vcmp.eq.s32.totalorder %v3427_v43, %v380_v28  ;;  %vm509_vm11 = vcmp.eq.s32.totalorder %v3427_v43, %v381_v29 }
  0xe0   : > { %2327 = vmatmul.mubr.msk.bf16.gmra.mrb[16].mxu1 %vm3807_vm7, %v3127_v47  ;;  %2265 = vmatprep.mubr.msk.bf16.mxu0 %vm3825_vm3, %v3127_v47  ;;  %v4517_v31 = vsel %vm3907_vm0, 4294967295, %v4516_v31  ;;  %vm4519_vm7 = vcmp.eq.s32.totalorder %v3429_v44, %v3511_v63  ;;  %vm4526_vm0 = vcmp.eq.s32.totalorder %v3433_v46, %v3504_v61  ;;  %vm3956_vm15 = vmpackc.low %vm500_vm10, %vm496_vm4  ;;  %vm4541_vm4 = vcmp.eq.s32.totalorder %v3429_v44, %v3517_v1 }
  0xe1   : > { %2329 = vmatprep.mubr.msk.bf16.mxu1 %vm3843_vm5, %v3127_v47  ;;  %vm3924_vm3 = vmpackc.low %vm4519_vm7, %vm4518_vm2  ;;  %vm502_vm5 = vcmp.eq.s32.totalorder %v3433_v46, %v3501_v60  ;;  %vm507_vm7 = vcmp.eq.s32.totalorder %v3429_v44, %v380_v28  ;;  %v4531_v35 = vsel %vm3956_vm15, 4294967295, %v4530_v35  ;;  %v4597_v60 = vmov 0 }
  0xe2   : > { %v4521_v32 = vsel %vm3924_vm3, 4294967295, %v4520_v32  ;;  %vm3940_vm2 = vmpackc.low %vm4523_vm1, %vm4522_vm13  ;;  %vm511_vm3 = vcmp.eq.s32.totalorder %v3429_v44, %v381_v29  ;;  %vm4532_vm13 = vcmp.eq.s32.totalorder %v3427_v43, %v3514_v0  ;;  %vm4533_vm1 = vcmp.eq.s32.totalorder %v3427_v43, %v3517_v1 }
  0xe3   : > { %v4525_v33 = vsel %vm3940_vm2, 4294967295, %v4524_v33  ;;  %vm3952_vm6 = vmpackc.low %vm4527_vm9, %vm4526_vm0  ;;  %vm4540_vm0 = vcmp.eq.s32.totalorder %v3429_v44, %v3514_v0  ;;  %v4603_v61 = vmov 0  ;;  %v4612_v63 = vmov 0 }
  0xe4   : > { %v4529_v34 = vsel %vm3952_vm6, 4294967295, %v4528_v34  ;;  %vm3966_vm2 = vmpackc.low %vm4533_vm1, %vm4532_vm13 }
  0xe5   : > { %v4535_v36 = vsel %vm3966_vm2, 4294967295, %v4534_v36  ;;  %vm3970_vm12 = vmpackc.low %vm502_vm5, %vm498_vm14  ;;  %vm4546_vm14 = vcmp.eq.s32.totalorder %v3431_v45, %v3514_v0  ;;  %vm4547_vm5 = vcmp.eq.s32.totalorder %v3431_v45, %v3517_v1  ;;  %vm4567_vm2 = vcmp.eq.s32.totalorder %v3431_v45, %v3526_v3 }
  0xe6   : > { %v4537_v37 = vsel %vm3970_vm12, 4294967295, %v4536_v37  ;;  %vm3974_vm9 = vmpackc.low %vm509_vm11, %vm505_vm8  ;;  %vm4551_vm11 = vcmp.eq.s32.totalorder %v3433_v46, %v3514_v0  ;;  %v4616_v0 = vmov 0 }
  0xe7   : > { %v4539_v38 = vsel %vm3974_vm9, 4294967295, %v4538_v38  ;;  %vm3984_vm10 = vmpackc.low %vm4541_vm4, %vm4540_vm0  ;;  %vm4555_vm0 = vnez %v4508_v26  ;;  %vm4556_vm4 = vnez %v4511_v27 }
  0xe8   : > { %v4543_v39 = vsel %vm3984_vm10, 4294967295, %v4542_v39  ;;  %vm3988_vm13 = vmpackc.low %vm511_vm3, %vm507_vm7  ;;  %vm4550_vm3 = vnez %v4504_v24  ;;  %vm4552_vm7 = vcmp.eq.s32.totalorder %v3433_v46, %v3517_v1  ;;  %2331 = vmatmul.mubr.msk.bf16.gmra.mrb[20].mxu1 %vm4555_vm0, %v3127_v47  ;;  %vm508_vm0 = vcmp.eq.s32.totalorder %v3431_v45, %v381_v29 }
  0xe9   : > { %v4545_v40 = vsel %vm3988_vm13, 4294967295, %v4544_v40  ;;  %vm4000_vm8 = vmpackc.low %vm4547_vm5, %vm4546_vm14  ;;  %2267 = vmatmul.mubr.msk.bf16.gmra.mrb[20].mxu0 %vm4550_vm3, %v3127_v47  ;;  %vm4557_vm14 = vcmp.eq.s32.totalorder %v3427_v43, %v3520_v2  ;;  %vm4558_vm5 = vcmp.eq.s32.totalorder %v3427_v43, %v3526_v3  ;;  %vm4566_vm10 = vcmp.eq.s32.totalorder %v3431_v45, %v3520_v2 }
  0xea   : > { %v4549_v48 = vsel %vm4000_vm8, 4294967295, %v4548_v48  ;;  %vm4013_vm1 = vmpackc.low %vm4552_vm7, %vm4551_vm11  ;;  %2269 = vmatprep.mubr.msk.bf16.mxu0 %vm4556_vm4, %v3127_v47  ;;  %vm4561_vm11 = vnez %v4513_v30  ;;  %vm504_vm7 = vcmp.eq.s32.totalorder %v3431_v45, %v380_v28  ;;  %vm4562_vm4 = vcmp.eq.s32.totalorder %v3429_v44, %v3520_v2 }
  0xeb   : > { %v4554_v25 = vsel %vm4013_vm1, 4294967295, %v4553_v25  ;;  %vm4029_vm3 = vmpackc.low %vm4558_vm5, %vm4557_vm14  ;;  %2333 = vmatprep.mubr.msk.bf16.mxu1 %vm4561_vm11, %v3127_v47  ;;  %vm4563_vm1 = vcmp.eq.s32.totalorder %v3429_v44, %v3526_v3  ;;  %vm506_vm14 = vcmp.eq.s32.totalorder %v3433_v46, %v380_v28  ;;  %vm510_vm5 = vcmp.eq.s32.totalorder %v3433_v46, %v381_v29 }
  0xec   : > { %v4560_v49 = vsel %vm4029_vm3, 4294967295, %v4559_v49  ;;  %vm4044_vm8 = vmpackc.low %vm4563_vm1, %vm4562_vm4  ;;  %vm513_vm11 = vcmp.eq.s32.totalorder %v3427_v43, %v382_v41  ;;  %vm517_vm3 = vcmp.eq.s32.totalorder %v3427_v43, %v383_v42  ;;  %vm515_vm1 = vcmp.eq.s32.totalorder %v3429_v44, %v382_v41 }
  0xed   : > { %v4565_v50 = vsel %vm4044_vm8, 4294967295, %v4564_v50  ;;  %vm4058_vm6 = vmpackc.low %vm4567_vm2, %vm4566_vm10  ;;  %vm519_vm4 = vcmp.eq.s32.totalorder %v3429_v44, %v383_v42  ;;  %vm4570_vm8 = vcmp.eq.s32.totalorder %v3433_v46, %v3520_v2  ;;  %vm4571_vm13 = vcmp.eq.s32.totalorder %v3433_v46, %v3526_v3 }
  0xee   : > { %v4569_v51 = vsel %vm4058_vm6, 4294967295, %v4568_v51  ;;  %vm4070_vm9 = vmpackc.low %vm4571_vm13, %vm4570_vm8  ;;  %vm4576_vm2 = vcmp.eq.s32.totalorder %v3427_v43, %v3529_v4  ;;  %vm4577_vm10 = vcmp.eq.s32.totalorder %v3427_v43, %v3532_v5  ;;  %vm4584_vm8 = vcmp.eq.s32.totalorder %v3429_v44, %v3529_v4 }
  0xef   : > { %vm4074_vm12 = vmpackc.low %vm508_vm0, %vm504_vm7  ;;  %vm4585_vm7 = vcmp.eq.s32.totalorder %v3429_v44, %v3532_v5  ;;  %v4620_v1 = vmov 0  ;;  %v4624_v2 = vmov 0  ;;  %v4628_v3 = vmov 0 }
  0xf0   : > { %vm4084_vm6 = vmpackc.low %vm4577_vm10, %vm4576_vm2 }
  0xf1   : > { %vm4088_vm15 = vmpackc.low %vm510_vm5, %vm506_vm14  ;;  %vm4591_vm14 = vcmp.eq.s32.totalorder %v3431_v45, %v3532_v5 }
  0xf2   : > { %vm4092_vm13 = vmpackc.low %vm517_vm3, %vm513_vm11  ;;  %vm4590_vm3 = vcmp.eq.s32.totalorder %v3431_v45, %v3529_v4  ;;  %vm4594_vm11 = vnez %v4531_v35 }
  0xf3   : > { %vm4102_vm0 = vmpackc.low %vm4585_vm7, %vm4584_vm8  ;;  %2271 = vmatmul.mubr.msk.bf16.gmra.mrb[24].mxu0 %vm4594_vm11, %v3127_v47  ;;  %vm4599_vm8 = vnez %v4537_v37  ;;  %vm4600_vm7 = vnez %v4539_v38  ;;  %v899_v37 = vld [vmem:[#allocation2 + $0x18] sm:$0xff] }
  0xf4   : > { %vm4106_vm2 = vmpackc.low %vm519_vm4, %vm515_vm1  ;;  %vm4595_vm1 = vcmp.eq.s32.totalorder %v3433_v46, %v3529_v4  ;;  %vm4596_vm4 = vcmp.eq.s32.totalorder %v3433_v46, %v3532_v5  ;;  %2335 = vmatmul.mubr.msk.bf16.gmra.mrb[24].mxu1 %vm4599_vm8, %v3127_v47  ;;  %2273 = vmatprep.mubr.msk.bf16.mxu0 %vm4600_vm7, %v3127_v47  ;;  %vm4607_vm8 = vcmp.eq.s32.totalorder %v3429_v44, %v3546_v7  ;;  %v4632_v4 = vmov 0 }
  0xf5   : > { %vm4116_vm5 = vmpackc.low %vm4591_vm14, %vm4590_vm3  ;;  %vm4601_vm3 = vcmp.eq.s32.totalorder %v3427_v43, %v3535_v6  ;;  %vm4602_vm14 = vcmp.eq.s32.totalorder %v3427_v43, %v3546_v7  ;;  %v4636_v5 = vmov 0 }
  0xf6   : > { %vm4129_vm10 = vmpackc.low %vm4596_vm4, %vm4595_vm1  ;;  %vm4605_vm1 = vnez %v4545_v40  ;;  %vm4606_vm4 = vcmp.eq.s32.totalorder %v3429_v44, %v3535_v6 }
  0xf7   : > { %v4598_v60 = vsel %vm4129_vm10, 4294967295, %v4597_v60  ;;  %vm4145_vm11 = vmpackc.low %vm4602_vm14, %vm4601_vm3  ;;  %2337 = vmatprep.mubr.msk.bf16.mxu1 %vm4605_vm1, %v3127_v47  ;;  %vm4610_vm3 = vcmp.eq.s32.totalorder %v3431_v45, %v3535_v6  ;;  %vm4611_vm14 = vcmp.eq.s32.totalorder %v3431_v45, %v3546_v7  ;;  %vm4614_vm1 = vcmp.eq.s32.totalorder %v3433_v46, %v3535_v6 }
  0xf8   : > { %v4604_v61 = vsel %vm4145_vm11, 4294967295, %v4603_v61  ;;  %vm4158_vm7 = vmpackc.low %vm4607_vm8, %vm4606_vm4  ;;  %vm4615_vm10 = vcmp.eq.s32.totalorder %v3433_v46, %v3546_v7  ;;  %vm4618_vm8 = vcmp.eq.s32.totalorder %v3427_v43, %v3549_v8 }
  0xf9   : > { %v4609_v62 = vsel %vm4158_vm7, 4294967295, %v4608_v62  ;;  %vm4168_vm11 = vmpackc.low %vm4611_vm14, %vm4610_vm3  ;;  %vm4619_vm7 = vcmp.eq.s32.totalorder %v3427_v43, %v3557_v9  ;;  %vm4622_vm14 = vcmp.eq.s32.totalorder %v3429_v44, %v3549_v8 }
  0xfa   : > { %v4613_v63 = vsel %vm4168_vm11, 4294967295, %v4612_v63  ;;  %vm4178_vm4 = vmpackc.low %vm4615_vm10, %vm4614_vm1  ;;  %vm4623_vm11 = vcmp.eq.s32.totalorder %v3429_v44, %v3557_v9  ;;  %vm4626_vm1 = vcmp.eq.s32.totalorder %v3431_v45, %v3549_v8 }
  0xfb   : > { %v4617_v0 = vsel %vm4178_vm4, 4294967295, %v4616_v0  ;;  %vm4188_vm3 = vmpackc.low %vm4619_vm7, %vm4618_vm8  ;;  %vm4627_vm4 = vcmp.eq.s32.totalorder %v3431_v45, %v3557_v9  ;;  %2275 = vmatmul.mubr.msk.bf16.gmra.mrb[28].mxu0 %vm4074_vm12, %v3127_v47  ;;  %vm4631_vm8 = vcmp.eq.s32.totalorder %v3433_v46, %v3557_v9  ;;  %vm4634_vm12 = vcmp.eq.s32.totalorder %v3427_v43, %v3560_v10 }
  0xfc   : > { %v4621_v1 = vsel %vm4188_vm3, 4294967295, %v4620_v1  ;;  %vm4198_vm10 = vmpackc.low %vm4623_vm11, %vm4622_vm14  ;;  %vm4630_vm11 = vcmp.eq.s32.totalorder %v3433_v46, %v3549_v8  ;;  %2339 = vmatmul.mubr.msk.bf16.gmra.mrb[28].mxu1 %vm4088_vm15, %v3127_v47  ;;  %2277 = vmatprep.mubr.msk.bf16.mxu0 %vm4092_vm13, %v3127_v47  ;;  %vm512_vm15 = vcmp.eq.s32.totalorder %v3431_v45, %v382_v41  ;;  %vm4638_vm13 = vcmp.eq.s32.totalorder %v3429_v44, %v3560_v10 }
  0xfd   : > { %v4625_v2 = vsel %vm4198_vm10, 4294967295, %v4624_v2  ;;  %vm4208_vm7 = vmpackc.low %vm4627_vm4, %vm4626_vm1  ;;  %vm4635_vm4 = vcmp.eq.s32.totalorder %v3427_v43, %v3662_v15  ;;  %2341 = vmatprep.mubr.msk.bf16.mxu1 %vm4106_vm2, %v3127_v47  ;;  %v4640_v43 = vmov 0  ;;  %vm4642_vm2 = vcmp.eq.s32.totalorder %v3431_v45, %v3560_v10 }
  0xfe   : > { %v4629_v3 = vsel %vm4208_vm7, 4294967295, %v4628_v3  ;;  %vm4221_vm14 = vmpackc.low %vm4631_vm8, %vm4630_vm11  ;;  %vm516_vm11 = vcmp.eq.s32.totalorder %v3431_v45, %v383_v42  ;;  %vm4639_vm8 = vcmp.eq.s32.totalorder %v3429_v44, %v3662_v15  ;;  %v902_v44 = vld [vmem:[#allocation2 + $0x30] sm:$0xff] }
  0xff   : > { %v4633_v4 = vsel %vm4221_vm14, 4294967295, %v4632_v4  ;;  %vm4237_vm1 = vmpackc.low %vm4635_vm4, %vm4634_vm12  ;;  %vm514_vm12 = vcmp.eq.s32.totalorder %v3433_v46, %v382_v41  ;;  %vm518_vm4 = vcmp.eq.s32.totalorder %v3433_v46, %v383_v42 }
 0x100   : > { %v4637_v5 = vsel %vm4237_vm1, 4294967295, %v4636_v5  ;;  %vm4252_vm14 = vmpackc.low %vm4639_vm8, %vm4638_vm13  ;;  %vm4643_vm1 = vcmp.eq.s32.totalorder %v3431_v45, %v3662_v15  ;;  %vm4646_vm13 = vcmp.eq.s32.totalorder %v3433_v46, %v3560_v10  ;;  %vm4647_vm8 = vcmp.eq.s32.totalorder %v3433_v46, %v3662_v15 }
 0x101   : > { %v4641_v43 = vsel %vm4252_vm14, 4294967295, %v4640_v43  ;;  %vm4264_vm7 = vmpackc.low %vm4643_vm1, %vm4642_vm2  ;;  %vm4650_vm1 = vnez %v4517_v31  ;;  %vm4651_vm2 = vnez %v4521_v32  ;;  %v898_v32 = vld [vmem:[#allocation2 + $0x10] sm:$0xff] }
 0x102   : > { %vm4274_vm14 = vmpackc.low %vm4647_vm8, %vm4646_vm13  ;;  %vm4652_vm13 = vnez %v4525_v33  ;;  %vm4659_vm8 = vnez %v4565_v50 }
 0x103   : > { %vm2278_vm10 = vmpackc.low %vm516_vm11, %vm512_vm15  ;;  %vm4653_vm15 = vnez %v4529_v34  ;;  %vm4656_vm11 = vnez %v4549_v48 }
 0x104   : > { %vm2342_vm3 = vmpackc.low %vm518_vm4, %vm514_vm12  ;;  %2279 = vmatmul.mubr.msk.bf16.gmra.mrb[32].mxu0 %vm2278_vm10, %v3127_v47  ;;  %vm4654_vm10 = vnez %v4535_v36  ;;  %vm4657_vm12 = vnez %v4554_v25  ;;  %vm4658_vm4 = vnez %v4560_v49 }
 0x105   : > { %2343 = vmatmul.mubr.msk.bf16.gmra.mrb[32].mxu1 %vm2342_vm3, %v3127_v47  ;;  %2281 = vmatprep.mubr.msk.bf16.mxu0 %vm4650_vm1, %v3127_v47  ;;  %vm4655_vm3 = vnez %v4543_v39  ;;  %vm4660_vm1 = vnez %v4569_v51 }
 0x106   : > { %2345 = vmatprep.mubr.msk.bf16.mxu1 %vm4651_vm2, %v3127_v47  ;;  %vm4661_vm2 = vnez %v4598_v60 }
 0x10c   : > { %2283 = vmatmul.mubr.msk.bf16.gmra.mrb[36].mxu0 %vm4652_vm13, %v3127_v47  ;;  %vm4662_vm13 = vnez %v4604_v61 }
 0x10d   : > { %2347 = vmatmul.mubr.msk.bf16.gmra.mrb[36].mxu1 %vm4653_vm15, %v3127_v47  ;;  %2285 = vmatprep.mubr.msk.bf16.mxu0 %vm4654_vm10, %v3127_v47  ;;  %vm4667_vm15 = vnez %v4625_v2  ;;  %vm4668_vm10 = vnez %v4629_v3 }
 0x10e   : > { %2349 = vmatprep.mubr.msk.bf16.mxu1 %vm4655_vm3, %v3127_v47  ;;  %vm4669_vm3 = vnez %v4633_v4 }
 0x114   : > { %2287 = vmatmul.mubr.msk.bf16.gmra.mrb[40].mxu0 %vm4656_vm11, %v3127_v47  ;;  %vm4670_vm11 = vnez %v4637_v5 }
 0x115   : > { %2351 = vmatmul.mubr.msk.bf16.gmra.mrb[40].mxu1 %vm4657_vm12, %v3127_v47  ;;  %2289 = vmatprep.mubr.msk.bf16.mxu0 %vm4658_vm4, %v3127_v47  ;;  %vm4671_vm12 = vnez %v4641_v43 }
 0x116   : > { %2353 = vmatprep.mubr.msk.bf16.mxu1 %vm4659_vm8, %v3127_v47 }
 0x11c   : > { %2291 = vmatmul.mubr.msk.bf16.gmra.mrb[44].mxu0 %vm4660_vm1, %v3127_v47 }
 0x11d   : > { %2355 = vmatmul.mubr.msk.bf16.gmra.mrb[44].mxu1 %vm4070_vm9, %v3127_v47  ;;  %2293 = vmatprep.mubr.msk.bf16.mxu0 %vm4084_vm6, %v3127_v47  ;;  %vm4663_vm9 = vnez %v4609_v62  ;;  %vm4664_vm6 = vnez %v4613_v63 }
 0x11e   : > { %2357 = vmatprep.mubr.msk.bf16.mxu1 %vm4102_vm0, %v3127_v47  ;;  %vm4665_vm0 = vnez %v4617_v0 }
 0x124   : > { %2295 = vmatmul.mubr.msk.bf16.gmra.mrb[48].mxu0 %vm4116_vm5, %v3127_v47  ;;  %vm4666_vm5 = vnez %v4621_v1 }
 0x125   : > { %2359 = vmatmul.mubr.msk.bf16.gmra.mrb[48].mxu1 %vm4661_vm2, %v3127_v47  ;;  %2297 = vmatprep.mubr.msk.bf16.mxu0 %vm4662_vm13, %v3127_v47 }
 0x126   : > { %2361 = vmatprep.mubr.msk.bf16.mxu1 %vm4663_vm9, %v3127_v47 }
 0x12c   : > { %2299 = vmatmul.mubr.msk.bf16.gmra.mrb[52].mxu0 %vm4664_vm6, %v3127_v47 }
 0x12d   : > { %2363 = vmatmul.mubr.msk.bf16.gmra.mrb[52].mxu1 %vm4665_vm0, %v3127_v47  ;;  %2301 = vmatprep.mubr.msk.bf16.mxu0 %vm4666_vm5, %v3127_v47 }
 0x12e   : > { %2365 = vmatprep.mubr.msk.bf16.mxu1 %vm4667_vm15, %v3127_v47 }
 0x134   : > { %2303 = vmatmul.mubr.msk.bf16.gmra.mrb[56].mxu0 %vm4668_vm10, %v3127_v47 }
 0x135   : > { %2367 = vmatmul.mubr.msk.bf16.gmra.mrb[56].mxu1 %vm4669_vm3, %v3127_v47  ;;  %2305 = vmatprep.mubr.msk.bf16.mxu0 %vm4670_vm11, %v3127_v47 }
 0x136   : > { %2369 = vmatprep.mubr.msk.bf16.mxu1 %vm4671_vm12, %v3127_v47 }
 0x13c   : > { %2307 = vmatmul.mubr.msk.bf16.gmra.mrb[60].mxu0 %vm4264_vm7, %v3127_v47 }
 0x13d   : > { %2371 = vmatmul.mubr.msk.bf16.gmra.mrb[60].mxu1 %vm4274_vm14, %v3127_v47 }
 0x192   : > { %v2396_v45 = vpop.f32.mrb[0].mxu0 }
 0x193   : > { %v2508_v46 = vpop.f32.mrb[0].mxu1  ;;  %v2397_v7 = vpop.f32.mrb[1].mxu0 }
 0x194   : > { %v2398_v8 = vadd.f32 %v2397_v7, %v2396_v45  ;;  %v2509_v9 = vpop.f32.mrb[1].mxu1  ;;  %v2399_v10 = vpop.f32.mrb[2].mxu0 }
 0x195   : > { %v2510_v11 = vadd.f32 %v2509_v9, %v2508_v46  ;;  %v2511_v12 = vpop.f32.mrb[2].mxu1  ;;  %v2400_v13 = vpop.f32.mrb[3].mxu0  ;;  %v903_v9 = vld [vmem:[#allocation2 + $0x38] sm:$0xff] }
 0x196   : > { %v2401_v15 = vadd.f32 %v2400_v13, %v2399_v10  ;;  %v2512_v16 = vpop.f32.mrb[3].mxu1 }
 0x197   : > { %v1380_v17 = vadd.f32 %v2510_v11, %v2398_v8  ;;  %v2513_v18 = vadd.f32 %v2512_v16, %v2511_v12 }
 0x199   : > { %v1506_v20 = vadd.f32 %v1380_v17, %v896_v14  ;;  %v1383_v21 = vadd.f32 %v2513_v18, %v2401_v15 }
 0x19a   : > { %v2402_v22 = vpop.f32.mrb[4].mxu0 }
 0x19b   : > { %1538 = vst [vmem:[#allocation2] sm:$0xff] %v1506_v20  ;;  %v1507_v47 = vadd.f32 %v1383_v21, %v897_v19  ;;  %v2514_v23 = vpop.f32.mrb[4].mxu1  ;;  %v2403_v24 = vpop.f32.mrb[5].mxu0 }
 0x19c   : > { %v2404_v26 = vadd.f32 %v2403_v24, %v2402_v22  ;;  %v2515_v27 = vpop.f32.mrb[5].mxu1  ;;  %v2405_v28 = vpop.f32.mrb[6].mxu0  ;;  %v904_v22 = vld [vmem:[#allocation2 + $0x40] sm:$0xff] }
 0x19d   : > { %1539 = vst [vmem:[#allocation2 + $0x8] sm:$0xff] %v1507_v47  ;;  %v2516_v29 = vadd.f32 %v2515_v27, %v2514_v23  ;;  %v2517_v30 = vpop.f32.mrb[6].mxu1  ;;  %v2406_v31 = vpop.f32.mrb[7].mxu0  ;;  %v905_v27 = vld [vmem:[#allocation2 + $0x48] sm:$0xff] }
 0x19e   : > { %v2407_v33 = vadd.f32 %v2406_v31, %v2405_v28  ;;  %v2518_v34 = vpop.f32.mrb[7].mxu1 }
 0x19f   : > { %v1388_v35 = vadd.f32 %v2516_v29, %v2404_v26  ;;  %v2519_v36 = vadd.f32 %v2518_v34, %v2517_v30 }
 0x1a1   : > { %v1508_v38 = vadd.f32 %v1388_v35, %v898_v32  ;;  %v1391_v39 = vadd.f32 %v2519_v36, %v2407_v33 }
 0x1a2   : > { %v2408_v40 = vpop.f32.mrb[8].mxu0 }
 0x1a3   : > { %1540 = vst [vmem:[#allocation2 + $0x10] sm:$0xff] %v1508_v38  ;;  %v1509_v41 = vadd.f32 %v1391_v39, %v899_v37  ;;  %v2520_v42 = vpop.f32.mrb[8].mxu1  ;;  %v2409_v48 = vpop.f32.mrb[9].mxu0 }
 0x1a4   : > { %v2410_v25 = vadd.f32 %v2409_v48, %v2408_v40  ;;  %v2521_v49 = vpop.f32.mrb[9].mxu1  ;;  %v2411_v50 = vpop.f32.mrb[10].mxu0  ;;  %v906_v40 = vld [vmem:[#allocation2 + $0x50] sm:$0xff] }
 0x1a5   : > { %1541 = vst [vmem:[#allocation2 + $0x18] sm:$0xff] %v1509_v41  ;;  %v2522_v51 = vadd.f32 %v2521_v49, %v2520_v42  ;;  %v2523_v52 = vpop.f32.mrb[10].mxu1  ;;  %v2412_v53 = vpop.f32.mrb[11].mxu0  ;;  %v907_v49 = vld [vmem:[#allocation2 + $0x58] sm:$0xff] }
 0x1a6   : > { %v2413_v55 = vadd.f32 %v2412_v53, %v2411_v50  ;;  %v2524_v56 = vpop.f32.mrb[11].mxu1 }
 0x1a7   : > { %v1396_v57 = vadd.f32 %v2522_v51, %v2410_v25  ;;  %v2525_v58 = vadd.f32 %v2524_v56, %v2523_v52 }
 0x1a9   : > { %v1510_v60 = vadd.f32 %v1396_v57, %v900_v54  ;;  %v1399_v61 = vadd.f32 %v2525_v58, %v2413_v55 }
 0x1aa   : > { %v2414_v62 = vpop.f32.mrb[12].mxu0 }
 0x1ab   : > { %1542 = vst [vmem:[#allocation2 + $0x20] sm:$0xff] %v1510_v60  ;;  %v1511_v63 = vadd.f32 %v1399_v61, %v901_v59  ;;  %v2526_v0 = vpop.f32.mrb[12].mxu1  ;;  %v2415_v1 = vpop.f32.mrb[13].mxu0 }
 0x1ac   : > { %v2416_v2 = vadd.f32 %v2415_v1, %v2414_v62  ;;  %v2527_v3 = vpop.f32.mrb[13].mxu1  ;;  %v2417_v4 = vpop.f32.mrb[14].mxu0  ;;  %v908_v62 = vld [vmem:[#allocation2 + $0x60] sm:$0xff] }
 0x1ad   : > { %1543 = vst [vmem:[#allocation2 + $0x28] sm:$0xff] %v1511_v63  ;;  %v2528_v5 = vadd.f32 %v2527_v3, %v2526_v0  ;;  %v2529_v43 = vpop.f32.mrb[14].mxu1  ;;  %v2418_v6 = vpop.f32.mrb[15].mxu0  ;;  %v909_v3 = vld [vmem:[#allocation2 + $0x68] sm:$0xff] }
 0x1ae   : > { %v2419_v45 = vadd.f32 %v2418_v6, %v2417_v4  ;;  %v2530_v46 = vpop.f32.mrb[15].mxu1 }
 0x1af   : > { %v1404_v7 = vadd.f32 %v2528_v5, %v2416_v2  ;;  %v2531_v8 = vadd.f32 %v2530_v46, %v2529_v43 }
 0x1b1   : > { %v1512_v10 = vadd.f32 %v1404_v7, %v902_v44  ;;  %v1407_v11 = vadd.f32 %v2531_v8, %v2419_v45 }
 0x1b2   : > { %v2420_v12 = vpop.f32.mrb[16].mxu0 }
 0x1b3   : > { %1544 = vst [vmem:[#allocation2 + $0x30] sm:$0xff] %v1512_v10  ;;  %v1513_v13 = vadd.f32 %v1407_v11, %v903_v9  ;;  %v2532_v14 = vpop.f32.mrb[16].mxu1  ;;  %v2421_v15 = vpop.f32.mrb[17].mxu0 }
 0x1b4   : > { %v2422_v16 = vadd.f32 %v2421_v15, %v2420_v12  ;;  %v2533_v17 = vpop.f32.mrb[17].mxu1  ;;  %v2423_v18 = vpop.f32.mrb[18].mxu0  ;;  %v910_v12 = vld [vmem:[#allocation2 + $0x70] sm:$0xff] }
 0x1b5   : > { %1545 = vst [vmem:[#allocation2 + $0x38] sm:$0xff] %v1513_v13  ;;  %v2534_v19 = vadd.f32 %v2533_v17, %v2532_v14  ;;  %v2535_v20 = vpop.f32.mrb[18].mxu1  ;;  %v2424_v21 = vpop.f32.mrb[19].mxu0  ;;  %v911_v17 = vld [vmem:[#allocation2 + $0x78] sm:$0xff] }
 0x1b6   : > { %v2425_v47 = vadd.f32 %v2424_v21, %v2423_v18  ;;  %v2536_v23 = vpop.f32.mrb[19].mxu1 }
 0x1b7   : > { %v1412_v24 = vadd.f32 %v2534_v19, %v2422_v16  ;;  %v2537_v26 = vadd.f32 %v2536_v23, %v2535_v20 }
 0x1b9   : > { %v1514_v28 = vadd.f32 %v1412_v24, %v904_v22  ;;  %v1415_v29 = vadd.f32 %v2537_v26, %v2425_v47 }
 0x1bb   : > { %1546 = vst [vmem:[#allocation2 + $0x40] sm:$0xff] %v1514_v28  ;;  %v1515_v31 = vadd.f32 %v1415_v29, %v905_v27  ;;  %v2538_v32 = vpop.f32.mrb[20].mxu1 }
 0x1bc   : > { %v2426_v30 = vpop.f32.mrb[20].mxu0  ;;  %v2539_v35 = vpop.f32.mrb[21].mxu1 }
 0x1bd   : > { %v2427_v33 = vpop.f32.mrb[21].mxu0  ;;  %1547 = vst [vmem:[#allocation2 + $0x48] sm:$0xff] %v1515_v31  ;;  %v2540_v37 = vadd.f32 %v2539_v35, %v2538_v32  ;;  %v2541_v38 = vpop.f32.mrb[22].mxu1  ;;  %v913_v35 = vld [vmem:[#allocation2 + $0x88] sm:$0xff] }
 0x1be   : > { %v2428_v34 = vadd.f32 %v2427_v33, %v2426_v30  ;;  %v2429_v36 = vpop.f32.mrb[22].mxu0  ;;  %v2542_v42 = vpop.f32.mrb[23].mxu1  ;;  %v912_v30 = vld [vmem:[#allocation2 + $0x80] sm:$0xff] }
 0x1bf   : > { %v2430_v39 = vpop.f32.mrb[23].mxu0  ;;  %v2543_v25 = vadd.f32 %v2542_v42, %v2541_v38 }
 0x1c0   : > { %v2431_v41 = vadd.f32 %v2430_v39, %v2429_v36  ;;  %v1420_v48 = vadd.f32 %v2540_v37, %v2428_v34 }
 0x1c2   : > { %v1516_v50 = vadd.f32 %v1420_v48, %v906_v40  ;;  %v1423_v51 = vadd.f32 %v2543_v25, %v2431_v41 }
 0x1c4   : > { %1548 = vst [vmem:[#allocation2 + $0x50] sm:$0xff] %v1516_v50  ;;  %v1517_v53 = vadd.f32 %v1423_v51, %v907_v49 }
 0x1c6   : > { %v2432_v52 = vpop.f32.mrb[24].mxu0  ;;  %1549 = vst [vmem:[#allocation2 + $0x58] sm:$0xff] %v1517_v53 }
 0x1c7   : > { %v2544_v54 = vpop.f32.mrb[24].mxu1  ;;  %v2433_v55 = vpop.f32.mrb[25].mxu0 }
 0x1c8   : > { %v2434_v56 = vadd.f32 %v2433_v55, %v2432_v52  ;;  %v2545_v57 = vpop.f32.mrb[25].mxu1  ;;  %v2435_v58 = vpop.f32.mrb[26].mxu0  ;;  %v914_v52 = vld [vmem:[#allocation2 + $0x90] sm:$0xff] }
 0x1c9   : > { %v2546_v59 = vadd.f32 %v2545_v57, %v2544_v54  ;;  %v2547_v60 = vpop.f32.mrb[26].mxu1  ;;  %v2436_v61 = vpop.f32.mrb[27].mxu0  ;;  %v915_v57 = vld [vmem:[#allocation2 + $0x98] sm:$0xff] }
 0x1ca   : > { %v2437_v63 = vadd.f32 %v2436_v61, %v2435_v58  ;;  %v2548_v0 = vpop.f32.mrb[27].mxu1 }
 0x1cb   : > { %v1428_v1 = vadd.f32 %v2546_v59, %v2434_v56  ;;  %v2549_v2 = vadd.f32 %v2548_v0, %v2547_v60 }
 0x1cd   : > { %v1518_v4 = vadd.f32 %v1428_v1, %v908_v62  ;;  %v1431_v5 = vadd.f32 %v2549_v2, %v2437_v63 }
 0x1ce   : > { %v2438_v43 = vpop.f32.mrb[28].mxu0 }
 0x1cf   : > { %1550 = vst [vmem:[#allocation2 + $0x60] sm:$0xff] %v1518_v4  ;;  %v1519_v6 = vadd.f32 %v1431_v5, %v909_v3  ;;  %v2550_v44 = vpop.f32.mrb[28].mxu1  ;;  %v2439_v45 = vpop.f32.mrb[29].mxu0 }
 0x1d0   : > { %v2440_v46 = vadd.f32 %v2439_v45, %v2438_v43  ;;  %v2551_v7 = vpop.f32.mrb[29].mxu1  ;;  %v2441_v8 = vpop.f32.mrb[30].mxu0  ;;  %v916_v43 = vld [vmem:[#allocation2 + $0xa0] sm:$0xff] }
 0x1d1   : > { %1551 = vst [vmem:[#allocation2 + $0x68] sm:$0xff] %v1519_v6  ;;  %v2552_v9 = vadd.f32 %v2551_v7, %v2550_v44  ;;  %v2553_v10 = vpop.f32.mrb[30].mxu1  ;;  %v2442_v11 = vpop.f32.mrb[31].mxu0  ;;  %v917_v7 = vld [vmem:[#allocation2 + $0xa8] sm:$0xff] }
 0x1d2   : > { %v2443_v13 = vadd.f32 %v2442_v11, %v2441_v8  ;;  %v2554_v14 = vpop.f32.mrb[31].mxu1 }
 0x1d3   : > { %v1436_v15 = vadd.f32 %v2552_v9, %v2440_v46  ;;  %v2555_v16 = vadd.f32 %v2554_v14, %v2553_v10 }
 0x1d5   : > { %v1520_v18 = vadd.f32 %v1436_v15, %v910_v12  ;;  %v1439_v19 = vadd.f32 %v2555_v16, %v2443_v13 }
 0x1d7   : > { %v2444_v20 = vpop.f32.mrb[32].mxu0  ;;  %1552 = vst [vmem:[#allocation2 + $0x70] sm:$0xff] %v1520_v18  ;;  %v1521_v21 = vadd.f32 %v1439_v19, %v911_v17 }
 0x1d8   : > { %v2556_v22 = vpop.f32.mrb[32].mxu1  ;;  %v2445_v47 = vpop.f32.mrb[33].mxu0 }
 0x1d9   : > { %v2446_v23 = vadd.f32 %v2445_v47, %v2444_v20  ;;  %v2557_v24 = vpop.f32.mrb[33].mxu1  ;;  %v2447_v26 = vpop.f32.mrb[34].mxu0  ;;  %1553 = vst [vmem:[#allocation2 + $0x78] sm:$0xff] %v1521_v21  ;;  %v918_v20 = vld [vmem:[#allocation2 + $0xb0] sm:$0xff] }
 0x1da   : > { %v2558_v27 = vadd.f32 %v2557_v24, %v2556_v22  ;;  %v2559_v28 = vpop.f32.mrb[34].mxu1  ;;  %v2448_v29 = vpop.f32.mrb[35].mxu0  ;;  %v919_v24 = vld [vmem:[#allocation2 + $0xb8] sm:$0xff] }
 0x1db   : > { %v2449_v31 = vadd.f32 %v2448_v29, %v2447_v26  ;;  %v2560_v32 = vpop.f32.mrb[35].mxu1 }
 0x1dc   : > { %v1444_v33 = vadd.f32 %v2558_v27, %v2446_v23  ;;  %v2561_v34 = vadd.f32 %v2560_v32, %v2559_v28 }
 0x1de   : > { %v1522_v36 = vadd.f32 %v1444_v33, %v912_v30  ;;  %v1447_v37 = vadd.f32 %v2561_v34, %v2449_v31 }
 0x1df   : > { %v2450_v38 = vpop.f32.mrb[36].mxu0 }
 0x1e0   : > { %1554 = vst [vmem:[#allocation2 + $0x80] sm:$0xff] %v1522_v36  ;;  %v1523_v39 = vadd.f32 %v1447_v37, %v913_v35  ;;  %v2562_v40 = vpop.f32.mrb[36].mxu1  ;;  %v2451_v41 = vpop.f32.mrb[37].mxu0 }
 0x1e1   : > { %v2452_v42 = vadd.f32 %v2451_v41, %v2450_v38  ;;  %v2563_v48 = vpop.f32.mrb[37].mxu1  ;;  %v2453_v25 = vpop.f32.mrb[38].mxu0  ;;  %v920_v38 = vld [vmem:[#allocation2 + $0xc0] sm:$0xff] }
 0x1e2   : > { %1555 = vst [vmem:[#allocation2 + $0x88] sm:$0xff] %v1523_v39  ;;  %v2564_v49 = vadd.f32 %v2563_v48, %v2562_v40  ;;  %v2565_v50 = vpop.f32.mrb[38].mxu1  ;;  %v2454_v51 = vpop.f32.mrb[39].mxu0  ;;  %v921_v48 = vld [vmem:[#allocation2 + $0xc8] sm:$0xff] }
 0x1e3   : > { %v2455_v53 = vadd.f32 %v2454_v51, %v2453_v25  ;;  %v2566_v54 = vpop.f32.mrb[39].mxu1 }
 0x1e4   : > { %v1452_v55 = vadd.f32 %v2564_v49, %v2452_v42  ;;  %v2567_v56 = vadd.f32 %v2566_v54, %v2565_v50 }
 0x1e6   : > { %v1524_v58 = vadd.f32 %v1452_v55, %v914_v52  ;;  %v1455_v59 = vadd.f32 %v2567_v56, %v2455_v53 }
 0x1e7   : > { %v2456_v60 = vpop.f32.mrb[40].mxu0 }
 0x1e8   : > { %1556 = vst [vmem:[#allocation2 + $0x90] sm:$0xff] %v1524_v58  ;;  %v1525_v61 = vadd.f32 %v1455_v59, %v915_v57  ;;  %v2568_v62 = vpop.f32.mrb[40].mxu1  ;;  %v2457_v63 = vpop.f32.mrb[41].mxu0 }
 0x1e9   : > { %v2458_v0 = vadd.f32 %v2457_v63, %v2456_v60  ;;  %v2569_v1 = vpop.f32.mrb[41].mxu1  ;;  %v2459_v2 = vpop.f32.mrb[42].mxu0  ;;  %v922_v60 = vld [vmem:[#allocation2 + $0xd0] sm:$0xff] }
 0x1ea   : > { %1557 = vst [vmem:[#allocation2 + $0x98] sm:$0xff] %v1525_v61  ;;  %v2570_v3 = vadd.f32 %v2569_v1, %v2568_v62  ;;  %v2571_v4 = vpop.f32.mrb[42].mxu1  ;;  %v2460_v5 = vpop.f32.mrb[43].mxu0  ;;  %v923_v1 = vld [vmem:[#allocation2 + $0xd8] sm:$0xff] }
 0x1eb   : > { %v2461_v6 = vadd.f32 %v2460_v5, %v2459_v2  ;;  %v2572_v44 = vpop.f32.mrb[43].mxu1 }
 0x1ec   : > { %v1460_v45 = vadd.f32 %v2570_v3, %v2458_v0  ;;  %v2573_v46 = vadd.f32 %v2572_v44, %v2571_v4 }
 0x1ee   : > { %v1526_v8 = vadd.f32 %v1460_v45, %v916_v43  ;;  %v1463_v9 = vadd.f32 %v2573_v46, %v2461_v6 }
 0x1ef   : > { %v2462_v10 = vpop.f32.mrb[44].mxu0 }
 0x1f0   : > { %1558 = vst [vmem:[#allocation2 + $0xa0] sm:$0xff] %v1526_v8  ;;  %v1527_v11 = vadd.f32 %v1463_v9, %v917_v7  ;;  %v2574_v12 = vpop.f32.mrb[44].mxu1  ;;  %v2463_v13 = vpop.f32.mrb[45].mxu0 }
 0x1f1   : > { %v2464_v14 = vadd.f32 %v2463_v13, %v2462_v10  ;;  %v2575_v15 = vpop.f32.mrb[45].mxu1  ;;  %v2465_v16 = vpop.f32.mrb[46].mxu0  ;;  %v924_v10 = vld [vmem:[#allocation2 + $0xe0] sm:$0xff] }
 0x1f2   : > { %1559 = vst [vmem:[#allocation2 + $0xa8] sm:$0xff] %v1527_v11  ;;  %v2576_v17 = vadd.f32 %v2575_v15, %v2574_v12  ;;  %v2577_v18 = vpop.f32.mrb[46].mxu1  ;;  %v2466_v19 = vpop.f32.mrb[47].mxu0  ;;  %v925_v15 = vld [vmem:[#allocation2 + $0xe8] sm:$0xff] }
 0x1f3   : > { %v2467_v21 = vadd.f32 %v2466_v19, %v2465_v16  ;;  %v2578_v22 = vpop.f32.mrb[47].mxu1 }
 0x1f4   : > { %v1468_v47 = vadd.f32 %v2576_v17, %v2464_v14  ;;  %v2579_v23 = vadd.f32 %v2578_v22, %v2577_v18 }
 0x1f6   : > { %v1528_v26 = vadd.f32 %v1468_v47, %v918_v20  ;;  %v1471_v27 = vadd.f32 %v2579_v23, %v2467_v21 }
 0x1f7   : > { %v2468_v28 = vpop.f32.mrb[48].mxu0 }
 0x1f8   : > { %1560 = vst [vmem:[#allocation2 + $0xb0] sm:$0xff] %v1528_v26  ;;  %v1529_v29 = vadd.f32 %v1471_v27, %v919_v24  ;;  %v2580_v30 = vpop.f32.mrb[48].mxu1  ;;  %v2469_v31 = vpop.f32.mrb[49].mxu0 }
 0x1f9   : > { %v2470_v32 = vadd.f32 %v2469_v31, %v2468_v28  ;;  %v2581_v33 = vpop.f32.mrb[49].mxu1  ;;  %v2471_v34 = vpop.f32.mrb[50].mxu0  ;;  %v926_v28 = vld [vmem:[#allocation2 + $0xf0] sm:$0xff] }
 0x1fa   : > { %1561 = vst [vmem:[#allocation2 + $0xb8] sm:$0xff] %v1529_v29  ;;  %v2582_v35 = vadd.f32 %v2581_v33, %v2580_v30  ;;  %v2583_v36 = vpop.f32.mrb[50].mxu1  ;;  %v2472_v37 = vpop.f32.mrb[51].mxu0  ;;  %v927_v33 = vld [vmem:[#allocation2 + $0xf8] sm:$0xff] }
 0x1fb   : > { %v2473_v39 = vadd.f32 %v2472_v37, %v2471_v34  ;;  %v2584_v40 = vpop.f32.mrb[51].mxu1  ;;  %v1606_v37 = vld [vmem:[#allocation9] sm:$0xff] (!%p2372_p13) }
 0x1fc   : > { %v1476_v41 = vadd.f32 %v2582_v35, %v2470_v32  ;;  %v2585_v42 = vadd.f32 %v2584_v40, %v2583_v36 }
 0x1fe   : > { %v1530_v25 = vadd.f32 %v1476_v41, %v920_v38  ;;  %v1479_v49 = vadd.f32 %v2585_v42, %v2473_v39  ;;  %v1607_v38 = vld [vmem:[#allocation9 + $0x8] sm:$0xff] (!%p2372_p13)  ;;  %v1608_v39 = vld [vmem:[#allocation9 + $0x10] sm:$0xff] (!%p2372_p13)  ;;  %v1609_v41 = vld [vmem:[#allocation9 + $0x18] sm:$0xff] (!%p2372_p13) }
 0x1ff   : > { %v2474_v50 = vpop.f32.mrb[52].mxu0  ;;  %v2732_v40 = vpack.c.bf16 (!%p2372_p13), %v1607_v38, %v1606_v37  ;;  %v2736_v42 = vpack.c.bf16 (!%p2372_p13), %v1609_v41, %v1608_v39 }
 0x200   : > { %1562 = vst [vmem:[#allocation2 + $0xc0] sm:$0xff] %v1530_v25  ;;  %v1531_v51 = vadd.f32 %v1479_v49, %v921_v48  ;;  %v2586_v52 = vpop.f32.mrb[52].mxu1  ;;  %v2475_v53 = vpop.f32.mrb[53].mxu0  ;;  %v1610_v48 = vld [vmem:[#allocation9 + $0x20] sm:$0xff] (!%p2372_p13)  ;;  %v1611_v25 = vld [vmem:[#allocation9 + $0x28] sm:$0xff] (!%p2372_p13) }
 0x201   : > { %v2476_v54 = vadd.f32 %v2475_v53, %v2474_v50  ;;  %v2587_v55 = vpop.f32.mrb[53].mxu1  ;;  %v2477_v56 = vpop.f32.mrb[54].mxu0  ;;  %2733 = vmatprep.subr.bf16.mxu0 (!%p2372_p13), %v2732_v40  ;;  %2764 = vmatprep.subr.bf16.mxu1 (!%p2372_p13), %v2732_v40  ;;  %v2740_v49 = vpack.c.bf16 (!%p2372_p13), %v1611_v25, %v1610_v48  ;;  %v1574_v50 = vld [vmem:[#allocation8] sm:$0xff] (!%p2372_p13)  ;;  %v1613_v53 = vld [vmem:[#allocation9 + $0x38] sm:$0xff] (!%p2372_p13)  ;;  %v1641_v48 = vld [vmem:[#allocation2 + $0x98] sm:$0xff] (!%p2372_p13) }
 0x202   : > { %1563 = vst [vmem:[#allocation2 + $0xc8] sm:$0xff] %v1531_v51  ;;  %v2588_v57 = vadd.f32 %v2587_v55, %v2586_v52  ;;  %v2589_v58 = vpop.f32.mrb[54].mxu1  ;;  %v2478_v59 = vpop.f32.mrb[55].mxu0  ;;  %2735 = vmatpush3.bf16.msra.mxu0 (!%p2372_p13), %v2732_v40  ;;  %2772 = vmatpush3.bf16.msra.mxu1 (!%p2372_p13), %v2732_v40  ;;  %v1590_v51 = vld [vmem:[#allocation8 + $0x80] sm:$0xff] (!%p2372_p13)  ;;  %v1612_v52 = vld [vmem:[#allocation9 + $0x30] sm:$0xff] (!%p2372_p13) }
 0x203   : > { %v2479_v61 = vadd.f32 %v2478_v59, %v2477_v56  ;;  %v2590_v62 = vpop.f32.mrb[55].mxu1  ;;  %2737 = vmatprep.subr.bf16.mxu0 (!%p2372_p13), %v2736_v42  ;;  %2765 = vmatprep.subr.bf16.mxu1 (!%p2372_p13), %v2736_v42  ;;  %v1614_v55 = vld [vmem:[#allocation9 + $0x40] sm:$0xff] (!%p2372_p13)  ;;  %v1615_v56 = vld [vmem:[#allocation9 + $0x48] sm:$0xff] (!%p2372_p13)  ;;  %v1617_v59 = vld [vmem:[#allocation9 + $0x58] sm:$0xff] (!%p2372_p13) }
 0x204   : > { %v1484_v63 = vadd.f32 %v2588_v57, %v2476_v54  ;;  %v2591_v0 = vadd.f32 %v2590_v62, %v2589_v58  ;;  %2684 = vmatprep.mubr.f32.mxu0 (!%p2372_p13), %v1574_v50  ;;  %2708 = vmatprep.mubr.f32.mxu1 (!%p2372_p13), %v1590_v51  ;;  %v2744_v54 = vpack.c.bf16 (!%p2372_p13), %v1613_v53, %v1612_v52  ;;  %v1616_v58 = vld [vmem:[#allocation9 + $0x50] sm:$0xff] (!%p2372_p13)  ;;  %v1619_v62 = vld [vmem:[#allocation9 + $0x68] sm:$0xff] (!%p2372_p13) }
 0x205   : > { %v2748_v57 = vpack.c.bf16 (!%p2372_p13), %v1615_v56, %v1614_v55  ;;  %v1624_v50 = vld [vmem:[#allocation2 + $0x10] sm:$0xff] (!%p2372_p13) }
 0x206   : > { %v1532_v2 = vadd.f32 %v1484_v63, %v922_v60  ;;  %v1487_v3 = vadd.f32 %v2591_v0, %v2479_v61  ;;  %2739 = vmatpush3.bf16.msra.mxu0 (!%p2372_p13), %v2736_v42  ;;  %2773 = vmatpush3.bf16.msra.mxu1 (!%p2372_p13), %v2736_v42  ;;  %v2752_v60 = vpack.c.bf16 (!%p2372_p13), %v1617_v59, %v1616_v58  ;;  %v1618_v61 = vld [vmem:[#allocation9 + $0x60] sm:$0xff] (!%p2372_p13)  ;;  %v1620_v0 = vld [vmem:[#allocation9 + $0x70] sm:$0xff] (!%p2372_p13)  ;;  %v1640_v51 = vld [vmem:[#allocation2 + $0x90] sm:$0xff] (!%p2372_p13) }
 0x207   : > { %v2480_v4 = vpop.f32.mrb[56].mxu0  ;;  %2741 = vmatprep.subr.bf16.mxu0 (!%p2372_p13), %v2740_v49  ;;  %2766 = vmatprep.subr.bf16.mxu1 (!%p2372_p13), %v2740_v49  ;;  %v2756_v63 = vpack.c.bf16 (!%p2372_p13), %v1619_v62, %v1618_v61  ;;  %v1625_v42 = vld [vmem:[#allocation2 + $0x18] sm:$0xff] (!%p2372_p13)  ;;  %v1627_v62 = vld [vmem:[#allocation2 + $0x28] sm:$0xff] (!%p2372_p13) }
 0x208   : > { %1564 = vst [vmem:[#allocation2 + $0xd0] sm:$0xff] %v1532_v2  ;;  %v1533_v5 = vadd.f32 %v1487_v3, %v923_v1  ;;  %v2592_v43 = vpop.f32.mrb[56].mxu1  ;;  %v2481_v6 = vpop.f32.mrb[57].mxu0  ;;  %v1621_v1 = vld [vmem:[#allocation9 + $0x78] sm:$0xff] (!%p2372_p13)  ;;  %v1575_v3 = vld [vmem:[#allocation8 + $0x8] sm:$0xff] (!%p2372_p13) }
 0x209   : > { %v2482_v44 = vadd.f32 %v2481_v6, %v2480_v4  ;;  %v2593_v45 = vpop.f32.mrb[57].mxu1  ;;  %v2483_v46 = vpop.f32.mrb[58].mxu0  ;;  %v2760_v2 = vpack.c.bf16 (!%p2372_p13), %v1621_v1, %v1620_v0  ;;  %v1591_v4 = vld [vmem:[#allocation8 + $0x88] sm:$0xff] (!%p2372_p13)  ;;  %v1577_v6 = vld [vmem:[#allocation8 + $0x18] sm:$0xff] (!%p2372_p13) }
 0x20a   : > { %1565 = vst [vmem:[#allocation2 + $0xd8] sm:$0xff] %v1533_v5  ;;  %v2594_v7 = vadd.f32 %v2593_v45, %v2592_v43  ;;  %v2595_v8 = vpop.f32.mrb[58].mxu1  ;;  %v2484_v9 = vpop.f32.mrb[59].mxu0  ;;  %2743 = vmatpush3.bf16.msra.mxu0 (!%p2372_p13), %v2740_v49  ;;  %2774 = vmatpush3.bf16.msra.mxu1 (!%p2372_p13), %v2740_v49  ;;  %v1576_v5 = vld [vmem:[#allocation8 + $0x10] sm:$0xff] (!%p2372_p13)  ;;  %v1578_v45 = vld [vmem:[#allocation8 + $0x20] sm:$0xff] (!%p2372_p13) }
 0x20b   : > { %v2485_v11 = vadd.f32 %v2484_v9, %v2483_v46  ;;  %v2596_v12 = vpop.f32.mrb[59].mxu1  ;;  %2745 = vmatprep.subr.bf16.mxu0 (!%p2372_p13), %v2744_v54  ;;  %2767 = vmatprep.subr.bf16.mxu1 (!%p2372_p13), %v2744_v54  ;;  %v1592_v43 = vld [vmem:[#allocation8 + $0x90] sm:$0xff] (!%p2372_p13)  ;;  %v1594_v46 = vld [vmem:[#allocation8 + $0xa0] sm:$0xff] (!%p2372_p13) }
 0x20c   : > { %v1492_v13 = vadd.f32 %v2594_v7, %v2482_v44  ;;  %v2597_v14 = vadd.f32 %v2596_v12, %v2595_v8  ;;  %v1593_v44 = vld [vmem:[#allocation8 + $0x98] sm:$0xff] (!%p2372_p13)  ;;  %v1579_v7 = vld [vmem:[#allocation8 + $0x28] sm:$0xff] (!%p2372_p13)  ;;  %v1580_v9 = vld [vmem:[#allocation8 + $0x30] sm:$0xff] (!%p2372_p13) }
 0x20d   : > { %v1595_v8 = vld [vmem:[#allocation8 + $0xa8] sm:$0xff] (!%p2372_p13)  ;;  %v1597_v12 = vld [vmem:[#allocation8 + $0xb8] sm:$0xff] (!%p2372_p13) }
 0x20e   : > { %v1534_v16 = vadd.f32 %v1492_v13, %v924_v10  ;;  %v1495_v17 = vadd.f32 %v2597_v14, %v2485_v11  ;;  %2747 = vmatpush3.bf16.msra.mxu0 (!%p2372_p13), %v2744_v54  ;;  %2775 = vmatpush3.bf16.msra.mxu1 (!%p2372_p13), %v2744_v54  ;;  %v1596_v10 = vld [vmem:[#allocation8 + $0xb0] sm:$0xff] (!%p2372_p13)  ;;  %v1581_v11 = vld [vmem:[#allocation8 + $0x38] sm:$0xff] (!%p2372_p13)  ;;  %v1582_v13 = vld [vmem:[#allocation8 + $0x40] sm:$0xff] (!%p2372_p13) }
 0x20f   : > { %v2486_v18 = vpop.f32.mrb[60].mxu0  ;;  %2749 = vmatprep.subr.bf16.mxu0 (!%p2372_p13), %v2748_v57  ;;  %2768 = vmatprep.subr.bf16.mxu1 (!%p2372_p13), %v2748_v57  ;;  %v1598_v14 = vld [vmem:[#allocation8 + $0xc0] sm:$0xff] (!%p2372_p13) }
 0x210   : > { %1566 = vst [vmem:[#allocation2 + $0xe0] sm:$0xff] %v1534_v16  ;;  %v1535_v19 = vadd.f32 %v1495_v17, %v925_v15  ;;  %v2598_v20 = vpop.f32.mrb[60].mxu1  ;;  %v2487_v21 = vpop.f32.mrb[61].mxu0  ;;  %v1583_v15 = vld [vmem:[#allocation8 + $0x48] sm:$0xff] (!%p2372_p13)  ;;  %v1584_v17 = vld [vmem:[#allocation8 + $0x50] sm:$0xff] (!%p2372_p13) }
 0x211   : > { %v2488_v22 = vadd.f32 %v2487_v21, %v2486_v18  ;;  %v2599_v47 = vpop.f32.mrb[61].mxu1  ;;  %v2489_v23 = vpop.f32.mrb[62].mxu0  ;;  %v1599_v16 = vld [vmem:[#allocation8 + $0xc8] sm:$0xff] (!%p2372_p13)  ;;  %v1600_v18 = vld [vmem:[#allocation8 + $0xd0] sm:$0xff] (!%p2372_p13)  ;;  %v1586_v21 = vld [vmem:[#allocation8 + $0x60] sm:$0xff] (!%p2372_p13) }
 0x212   : > { %1567 = vst [vmem:[#allocation2 + $0xe8] sm:$0xff] %v1535_v19  ;;  %v2600_v24 = vadd.f32 %v2599_v47, %v2598_v20  ;;  %v2601_v26 = vpop.f32.mrb[62].mxu1  ;;  %v2490_v27 = vpop.f32.mrb[63].mxu0  ;;  %2751 = vmatpush3.bf16.msra.mxu0 (!%p2372_p13), %v2748_v57  ;;  %2776 = vmatpush3.bf16.msra.mxu1 (!%p2372_p13), %v2748_v57  ;;  %v1585_v19 = vld [vmem:[#allocation8 + $0x58] sm:$0xff] (!%p2372_p13)  ;;  %v1587_v47 = vld [vmem:[#allocation8 + $0x68] sm:$0xff] (!%p2372_p13) }
 0x213   : > { %v2491_v29 = vadd.f32 %v2490_v27, %v2489_v23  ;;  %v2602_v30 = vpop.f32.mrb[63].mxu1  ;;  %2753 = vmatprep.subr.bf16.mxu0 (!%p2372_p13), %v2752_v60  ;;  %2769 = vmatprep.subr.bf16.mxu1 (!%p2372_p13), %v2752_v60  ;;  %v1601_v20 = vld [vmem:[#allocation8 + $0xd8] sm:$0xff] (!%p2372_p13)  ;;  %v1603_v23 = vld [vmem:[#allocation8 + $0xe8] sm:$0xff] (!%p2372_p13) }
 0x214   : > { %v1500_v31 = vadd.f32 %v2600_v24, %v2488_v22  ;;  %v2603_v32 = vadd.f32 %v2602_v30, %v2601_v26  ;;  %1573 = sbr.rel (%p2372_p13) target bundleno = 791 (0x317), region = 64  ;;  %v1602_v22 = vld [vmem:[#allocation8 + $0xe0] sm:$0xff] (!%p2372_p13)  ;;  %v1588_v24 = vld [vmem:[#allocation8 + $0x70] sm:$0xff] (!%p2372_p13)  ;;  %v1589_v27 = vld [vmem:[#allocation8 + $0x78] sm:$0xff] (!%p2372_p13) }
 0x215   : > { %v1604_v26 = vld [vmem:[#allocation8 + $0xf0] sm:$0xff] (!%p2372_p13)  ;;  %v1639_v30 = vld [vmem:[#allocation2 + $0x88] sm:$0xff] (!%p2372_p13) }
 0x216   : > { %v1536_v34 = vadd.f32 %v1500_v31, %v926_v28  ;;  %v1503_v35 = vadd.f32 %v2603_v32, %v2491_v29  ;;  %2755 = vmatpush3.bf16.msra.mxu0 (!%p2372_p13), %v2752_v60  ;;  %2777 = vmatpush3.bf16.msra.mxu1 (!%p2372_p13), %v2752_v60  ;;  %v1605_v28 = vld [vmem:[#allocation8 + $0xf8] sm:$0xff] (!%p2372_p13)  ;;  %v1623_v29 = vld [vmem:[#allocation2 + $0x8] sm:$0xff] (!%p2372_p13) }
 0x217   : > { %2757 = vmatprep.subr.bf16.mxu0 (!%p2372_p13), %v2756_v63  ;;  %2770 = vmatprep.subr.bf16.mxu1 (!%p2372_p13), %v2756_v63  ;;  %v1622_v31 = vld [vmem:[#allocation2] sm:$0xff] (!%p2372_p13) }
 0x218   : > { %1568 = vst [vmem:[#allocation2 + $0xf0] sm:$0xff] %v1536_v34  ;;  %v1537_v36 = vadd.f32 %v1503_v35, %v927_v33  ;;  %v1638_v32 = vld [vmem:[#allocation2 + $0x80] sm:$0xff] (!%p2372_p13) }
 0x219   : > { %v4368_v34 = vld [vmem:[%s4447_s4] ss:$0 sm:$0xff] (!%p2372_p13) }
 0x21a   : > { %1569 = vst [vmem:[#allocation2 + $0xf8] sm:$0xff] %v1537_v36  ;;  %2759 = vmatpush3.bf16.msra.mxu0 (!%p2372_p13), %v2756_v63  ;;  %2778 = vmatpush3.bf16.msra.mxu1 (!%p2372_p13), %v2756_v63  ;;  %v1643_v63 = vld [vmem:[#allocation2 + $0xa8] sm:$0xff] (!%p2372_p13) }
 0x21b   : > { %2761 = vmatprep.subr.bf16.mxu0 %v2760_v2  ;;  %2771 = vmatprep.subr.bf16.mxu1 %v2760_v2 }
 0x21e   : > { %2763 = vmatpush3.bf16.msra.mxu0 %v2760_v2  ;;  %2779 = vmatpush3.bf16.msra.mxu1 %v2760_v2  ;;  %v1626_v2 = vld [vmem:[#allocation2 + $0x20] sm:$0xff] }
 0x221   : > { %2685 = vmatmul.mubr.f32.vlgmr.msra.gmra.mrb[0].mxu0 %v1575_v3  ;;  %2709 = vmatmul.mubr.f32.vlgmr.msra.gmra.mrb[0].mxu1 %v1591_v4  ;;  %v1642_v3 = vld [vmem:[#allocation2 + $0xa0] sm:$0xff] }
 0x222   : > { %2687 = vmatprep.mubr.f32.mxu0 %v1576_v5  ;;  %2711 = vmatprep.mubr.f32.mxu1 %v1592_v43 }
 0x225   : > { %2688 = vmatmul.mubr.f32.gmra.mrb[2].mxu0 %v1577_v6  ;;  %2712 = vmatmul.mubr.f32.gmra.mrb[2].mxu1 %v1593_v44 }
 0x226   : > { %2690 = vmatprep.mubr.f32.mxu0 %v1578_v45  ;;  %2714 = vmatprep.mubr.f32.mxu1 %v1594_v46 }
 0x229   : > { %2691 = vmatmul.mubr.f32.gmra.mrb[4].mxu0 %v1579_v7  ;;  %2715 = vmatmul.mubr.f32.gmra.mrb[4].mxu1 %v1595_v8 }
 0x22a   : > { %2693 = vmatprep.mubr.f32.mxu0 %v1580_v9  ;;  %2717 = vmatprep.mubr.f32.mxu1 %v1596_v10  ;;  %v1629_v10 = vld [vmem:[#allocation2 + $0x38] sm:$0xff] }
 0x22d   : > { %2694 = vmatmul.mubr.f32.gmra.mrb[6].mxu0 %v1581_v11  ;;  %2718 = vmatmul.mubr.f32.gmra.mrb[6].mxu1 %v1597_v12  ;;  %v1645_v11 = vld [vmem:[#allocation2 + $0xb8] sm:$0xff] }
 0x22e   : > { %2696 = vmatprep.mubr.f32.mxu0 %v1582_v13  ;;  %2720 = vmatprep.mubr.f32.mxu1 %v1598_v14  ;;  %v1628_v14 = vld [vmem:[#allocation2 + $0x30] sm:$0xff] }
 0x231   : > { %2697 = vmatmul.mubr.f32.gmra.mrb[8].mxu0 %v1583_v15  ;;  %2721 = vmatmul.mubr.f32.gmra.mrb[8].mxu1 %v1599_v16  ;;  %v1644_v15 = vld [vmem:[#allocation2 + $0xb0] sm:$0xff] }
 0x232   : > { %2699 = vmatprep.mubr.f32.mxu0 %v1584_v17  ;;  %2723 = vmatprep.mubr.f32.mxu1 %v1600_v18 }
 0x235   : > { %2700 = vmatmul.mubr.f32.gmra.mrb[10].mxu0 %v1585_v19  ;;  %2724 = vmatmul.mubr.f32.gmra.mrb[10].mxu1 %v1601_v20 }
 0x236   : > { %2702 = vmatprep.mubr.f32.mxu0 %v1586_v21  ;;  %2726 = vmatprep.mubr.f32.mxu1 %v1602_v22 }
 0x239   : > { %2703 = vmatmul.mubr.f32.gmra.mrb[12].mxu0 %v1587_v47  ;;  %2727 = vmatmul.mubr.f32.gmra.mrb[12].mxu1 %v1603_v23 }
 0x23a   : > { %2705 = vmatprep.mubr.f32.mxu0 %v1588_v24  ;;  %2729 = vmatprep.mubr.f32.mxu1 %v1604_v26  ;;  %v1631_v26 = vld [vmem:[#allocation2 + $0x48] sm:$0xff] }
 0x23d   : > { %2706 = vmatmul.mubr.f32.gmra.mrb[14].mxu0 %v1589_v27  ;;  %2730 = vmatmul.mubr.f32.gmra.mrb[14].mxu1 %v1605_v28  ;;  %v1647_v27 = vld [vmem:[#allocation2 + $0xc8] sm:$0xff] }
 0x2f4   : > { %v2686_v33 = vpop.f32.mrb[0].mxu0  ;;  %v2710_v35 = vpop.f32.mrb[0].mxu1 }
 0x2f5   : > { %v1726_v36 = vadd.f32 %v2686_v33, %v1623_v29  ;;  %v1806_v37 = vadd.f32 %v2710_v35, %v1639_v30  ;;  %v1720_v38 = vpop.f32.mrb[1].mxu0  ;;  %v1800_v39 = vpop.f32.mrb[1].mxu1  ;;  %v1630_v30 = vld [vmem:[#allocation2 + $0x40] sm:$0xff] }
 0x2f6   : > { %v1721_v40 = vadd.f32 %v1720_v38, %v1622_v31  ;;  %v1801_v41 = vadd.f32 %v1800_v39, %v1638_v32  ;;  %v1646_v31 = vld [vmem:[#allocation2 + $0xc0] sm:$0xff] }
 0x2f7   : > { %v1887_v25 = vadd.f32 %v4368_v34, %v1726_v36  ;;  %v1903_v49 = vadd.f32 %v4368_v34, %v1806_v37 }
 0x2f8   : > { %v1886_v52 = vadd.f32 %v4368_v34, %v1721_v40  ;;  %v1902_v53 = vadd.f32 %v4368_v34, %v1801_v41  ;;  %v2689_v54 = vpop.f32.mrb[2].mxu0  ;;  %v2713_v55 = vpop.f32.mrb[2].mxu1 }
 0x2f9   : > { %1919 = vst [vmem:[#allocation11 + $0x8] sm:$0xff] %v1887_v25  ;;  %1935 = vst [vmem:[#allocation11 + $0x88] sm:$0xff] %v1903_v49  ;;  %v1736_v56 = vadd.f32 %v2689_v54, %v1625_v42  ;;  %v1816_v57 = vadd.f32 %v2713_v55, %v1641_v48  ;;  %v1730_v58 = vpop.f32.mrb[3].mxu0  ;;  %v1810_v59 = vpop.f32.mrb[3].mxu1  ;;  %v1633_v48 = vld [vmem:[#allocation2 + $0x58] sm:$0xff] }
 0x2fa   : > { %1918 = vst [vmem:[#allocation11] sm:$0xff] %v1886_v52  ;;  %1934 = vst [vmem:[#allocation11 + $0x80] sm:$0xff] %v1902_v53  ;;  %v1731_v60 = vadd.f32 %v1730_v58, %v1624_v50  ;;  %v1811_v61 = vadd.f32 %v1810_v59, %v1640_v51  ;;  %v1649_v25 = vld [vmem:[#allocation2 + $0xd8] sm:$0xff]  ;;  %v1632_v51 = vld [vmem:[#allocation2 + $0x50] sm:$0xff] }
 0x2fb   : > { %v1889_v0 = vadd.f32 %v4368_v34, %v1736_v56  ;;  %v1905_v1 = vadd.f32 %v4368_v34, %v1816_v57  ;;  %v1648_v52 = vld [vmem:[#allocation2 + $0xd0] sm:$0xff] }
 0x2fc   : > { %v1888_v4 = vadd.f32 %v4368_v34, %v1731_v60  ;;  %v1904_v5 = vadd.f32 %v4368_v34, %v1811_v61  ;;  %v2692_v43 = vpop.f32.mrb[4].mxu0  ;;  %v2716_v6 = vpop.f32.mrb[4].mxu1 }
 0x2fd   : > { %1921 = vst [vmem:[#allocation11 + $0x18] sm:$0xff] %v1889_v0  ;;  %1937 = vst [vmem:[#allocation11 + $0x98] sm:$0xff] %v1905_v1  ;;  %v1746_v44 = vadd.f32 %v2692_v43, %v1627_v62  ;;  %v1826_v45 = vadd.f32 %v2716_v6, %v1643_v63  ;;  %v1740_v46 = vpop.f32.mrb[5].mxu0  ;;  %v1820_v7 = vpop.f32.mrb[5].mxu1  ;;  %v1635_v63 = vld [vmem:[#allocation2 + $0x68] sm:$0xff] }
 0x2fe   : > { %1920 = vst [vmem:[#allocation11 + $0x10] sm:$0xff] %v1888_v4  ;;  %1936 = vst [vmem:[#allocation11 + $0x90] sm:$0xff] %v1904_v5  ;;  %v1741_v8 = vadd.f32 %v1740_v46, %v1626_v2  ;;  %v1821_v9 = vadd.f32 %v1820_v7, %v1642_v3  ;;  %v1651_v0 = vld [vmem:[#allocation2 + $0xe8] sm:$0xff]  ;;  %v1634_v3 = vld [vmem:[#allocation2 + $0x60] sm:$0xff] }
 0x2ff   : > { %v1891_v12 = vadd.f32 %v4368_v34, %v1746_v44  ;;  %v1907_v13 = vadd.f32 %v4368_v34, %v1826_v45  ;;  %v1650_v4 = vld [vmem:[#allocation2 + $0xe0] sm:$0xff] }
 0x300   : > { %v1890_v16 = vadd.f32 %v4368_v34, %v1741_v8  ;;  %v1906_v17 = vadd.f32 %v4368_v34, %v1821_v9  ;;  %v2695_v18 = vpop.f32.mrb[6].mxu0  ;;  %v2719_v19 = vpop.f32.mrb[6].mxu1 }
 0x301   : > { %1923 = vst [vmem:[#allocation11 + $0x28] sm:$0xff] %v1891_v12  ;;  %1939 = vst [vmem:[#allocation11 + $0xa8] sm:$0xff] %v1907_v13  ;;  %v1756_v20 = vadd.f32 %v2695_v18, %v1629_v10  ;;  %v1836_v21 = vadd.f32 %v2719_v19, %v1645_v11  ;;  %v1750_v22 = vpop.f32.mrb[7].mxu0  ;;  %v1830_v47 = vpop.f32.mrb[7].mxu1  ;;  %v1637_v11 = vld [vmem:[#allocation2 + $0x78] sm:$0xff] }
 0x302   : > { %1922 = vst [vmem:[#allocation11 + $0x20] sm:$0xff] %v1890_v16  ;;  %1938 = vst [vmem:[#allocation11 + $0xa0] sm:$0xff] %v1906_v17  ;;  %v1751_v23 = vadd.f32 %v1750_v22, %v1628_v14  ;;  %v1831_v24 = vadd.f32 %v1830_v47, %v1644_v15  ;;  %v1653_v12 = vld [vmem:[#allocation2 + $0xf8] sm:$0xff]  ;;  %v1636_v15 = vld [vmem:[#allocation2 + $0x70] sm:$0xff] }
 0x303   : > { %v1893_v28 = vadd.f32 %v4368_v34, %v1756_v20  ;;  %v1909_v29 = vadd.f32 %v4368_v34, %v1836_v21  ;;  %v1652_v16 = vld [vmem:[#allocation2 + $0xf0] sm:$0xff] }
 0x304   : > { %v1892_v32 = vadd.f32 %v4368_v34, %v1751_v23  ;;  %v1908_v33 = vadd.f32 %v4368_v34, %v1831_v24  ;;  %v2698_v35 = vpop.f32.mrb[8].mxu0  ;;  %v2722_v36 = vpop.f32.mrb[8].mxu1 }
 0x305   : > { %1925 = vst [vmem:[#allocation11 + $0x38] sm:$0xff] %v1893_v28  ;;  %1941 = vst [vmem:[#allocation11 + $0xb8] sm:$0xff] %v1909_v29  ;;  %v1766_v37 = vadd.f32 %v2698_v35, %v1631_v26  ;;  %v1846_v38 = vadd.f32 %v2722_v36, %v1647_v27  ;;  %v1760_v39 = vpop.f32.mrb[9].mxu0  ;;  %v1840_v40 = vpop.f32.mrb[9].mxu1 }
 0x306   : > { %1924 = vst [vmem:[#allocation11 + $0x30] sm:$0xff] %v1892_v32  ;;  %1940 = vst [vmem:[#allocation11 + $0xb0] sm:$0xff] %v1908_v33  ;;  %v1761_v41 = vadd.f32 %v1760_v39, %v1630_v30  ;;  %v1841_v42 = vadd.f32 %v1840_v40, %v1646_v31 }
 0x307   : > { %v1895_v49 = vadd.f32 %v4368_v34, %v1766_v37  ;;  %v1911_v50 = vadd.f32 %v4368_v34, %v1846_v38 }
 0x308   : > { %v1894_v53 = vadd.f32 %v4368_v34, %v1761_v41  ;;  %v1910_v54 = vadd.f32 %v4368_v34, %v1841_v42  ;;  %v2701_v55 = vpop.f32.mrb[10].mxu0  ;;  %v2725_v56 = vpop.f32.mrb[10].mxu1 }
 0x309   : > { %1927 = vst [vmem:[#allocation11 + $0x48] sm:$0xff] %v1895_v49  ;;  %1943 = vst [vmem:[#allocation11 + $0xc8] sm:$0xff] %v1911_v50  ;;  %v1776_v57 = vadd.f32 %v2701_v55, %v1633_v48  ;;  %v1856_v58 = vadd.f32 %v2725_v56, %v1649_v25  ;;  %v1770_v59 = vpop.f32.mrb[11].mxu0  ;;  %v1850_v60 = vpop.f32.mrb[11].mxu1 }
 0x30a   : > { %1926 = vst [vmem:[#allocation11 + $0x40] sm:$0xff] %v1894_v53  ;;  %1942 = vst [vmem:[#allocation11 + $0xc0] sm:$0xff] %v1910_v54  ;;  %v1771_v61 = vadd.f32 %v1770_v59, %v1632_v51  ;;  %v1851_v62 = vadd.f32 %v1850_v60, %v1648_v52 }
 0x30b   : > { %v1897_v1 = vadd.f32 %v4368_v34, %v1776_v57  ;;  %v1913_v2 = vadd.f32 %v4368_v34, %v1856_v58 }
 0x30c   : > { %v1896_v5 = vadd.f32 %v4368_v34, %v1771_v61  ;;  %v1912_v43 = vadd.f32 %v4368_v34, %v1851_v62  ;;  %v2704_v6 = vpop.f32.mrb[12].mxu0  ;;  %v2728_v44 = vpop.f32.mrb[12].mxu1 }
 0x30d   : > { %1929 = vst [vmem:[#allocation11 + $0x58] sm:$0xff] %v1897_v1  ;;  %1945 = vst [vmem:[#allocation11 + $0xd8] sm:$0xff] %v1913_v2  ;;  %v1786_v45 = vadd.f32 %v2704_v6, %v1635_v63  ;;  %v1866_v46 = vadd.f32 %v2728_v44, %v1651_v0  ;;  %v1780_v7 = vpop.f32.mrb[13].mxu0  ;;  %v1860_v8 = vpop.f32.mrb[13].mxu1 }
 0x30e   : > { %1928 = vst [vmem:[#allocation11 + $0x50] sm:$0xff] %v1896_v5  ;;  %1944 = vst [vmem:[#allocation11 + $0xd0] sm:$0xff] %v1912_v43  ;;  %v1781_v9 = vadd.f32 %v1780_v7, %v1634_v3  ;;  %v1861_v10 = vadd.f32 %v1860_v8, %v1650_v4 }
 0x30f   : > { %v1899_v13 = vadd.f32 %v4368_v34, %v1786_v45  ;;  %v1915_v14 = vadd.f32 %v4368_v34, %v1866_v46 }
 0x310   : > { %v1898_v17 = vadd.f32 %v4368_v34, %v1781_v9  ;;  %v1914_v18 = vadd.f32 %v4368_v34, %v1861_v10  ;;  %v2707_v19 = vpop.f32.mrb[14].mxu0  ;;  %v2731_v20 = vpop.f32.mrb[14].mxu1 }
 0x311   : > { %1931 = vst [vmem:[#allocation11 + $0x68] sm:$0xff] %v1899_v13  ;;  %1947 = vst [vmem:[#allocation11 + $0xe8] sm:$0xff] %v1915_v14  ;;  %v1796_v21 = vadd.f32 %v2707_v19, %v1637_v11  ;;  %v1876_v22 = vadd.f32 %v2731_v20, %v1653_v12  ;;  %v1790_v47 = vpop.f32.mrb[15].mxu0  ;;  %v1870_v23 = vpop.f32.mrb[15].mxu1 }
 0x312   : > { %1930 = vst [vmem:[#allocation11 + $0x60] sm:$0xff] %v1898_v17  ;;  %1946 = vst [vmem:[#allocation11 + $0xe0] sm:$0xff] %v1914_v18  ;;  %v1791_v24 = vadd.f32 %v1790_v47, %v1636_v15  ;;  %v1871_v26 = vadd.f32 %v1870_v23, %v1652_v16 }
 0x313   : > { %v1901_v27 = vadd.f32 %v4368_v34, %v1796_v21  ;;  %v1917_v28 = vadd.f32 %v4368_v34, %v1876_v22 }
 0x314   : > { %v1900_v29 = vadd.f32 %v4368_v34, %v1791_v24  ;;  %v1916_v30 = vadd.f32 %v4368_v34, %v1871_v26 }
 0x315   : > { %1933 = vst [vmem:[#allocation11 + $0x78] sm:$0xff] %v1901_v27  ;;  %1949 = vst [vmem:[#allocation11 + $0xf8] sm:$0xff] %v1917_v28 }
 0x316   : > { %1932 = vst [vmem:[#allocation11 + $0x70] sm:$0xff] %v1900_v29  ;;  %1948 = vst [vmem:[#allocation11 + $0xf0] sm:$0xff] %v1916_v30 }
 0x317 PF: > { %p2815_p2 = scmp.eq.s32.totalorder %s3190_s24, 1  ;;  %s3128_s26 = smov [#allocation11]  }
 0x318   : > { %s1959_s17 = sshll.u32 %s3128_s26, 4  ;;  %s1960_s17 = int_to_ptr.vmem [resolvable:$true] %s1959_s17 }
 0x319   : > { %s3024_s28 = scalar_lea.vmem %s1960_s17, 4096  ;;  %p3031_p8 = scmp.lt.s32.totalorder %s1960_s17, %s1960_s17 }
 0x31a   : > { %p3025_p3 = scmp.ne.s32.totalorder %s1960_s17, %s3024_s28  ;;  %p3032_p1 = scmp.lt.s32.totalorder %s3024_s28, %s3024_s28 }
 0x31c   : > { %p3026_p0 = pnand %p3025_p3, %p2815_p2  ;;  %p3033_p12 = por %p3032_p1, %p3031_p8 }
 0x31e   : > { %p3027_p6 = pneg %p3026_p0 }
 0x320   : > { %p3034_p9 = pnand %p3033_p12, %p3027_p6 }
 0x322   : > { %3037 = shalt.err (!%p3034_p9)
}
 0x323   : > { %s3038_s27 = scalar_lea.hbm %s4448_s5, 4096 }
 0x324   : > { %p3039_p7 = scmp.ne.s32.totalorder %s4448_s5, %s3038_s27  ;;  %p3044_p10 = scmp.lt.u32.totalorder %s3038_s27, %s4448_s5 }
 0x326   : > { %p3040_p4 = pnand %p3039_p7, %p2815_p2 }
 0x328   : > { %p3041_p5 = pneg %p3040_p4 }
 0x32a   : > { %p3046_p11 = pnand %p3044_p10, %p3041_p5 }
 0x32c   : > { %3049 = shalt.err (!%p3046_p11)
}
 0x32d   : > { %s3129_s9 = smov 128   ;;  %s3130_s11 = smov 8  }
 0x32e   : > { %2793 = dma.vmem_to_hbm [thread:$0]  (%p2815_p2), %s1960_s17, 4096, %s4448_s5, [#allocation5], %s3129_s9, %s3129_s9, %s3130_s11  }
 0x32f   : > { %3091 = dma.done.wait (%p2815_p2), [#allocation5], 4096  }
 0x330   : > { %3093 = vsyncadd (%p2815_p2), [#allocation5], 4294963200 }
 0x331 PF: > { %s23_s23 = sadd.s32 1, %s3116_s23   ;;  %s4672_s18 = smov %s3100_s19 }
 0x332   : > { %p20_p13 = scmp.ge.s32.totalorder %s23_s23, 4   ;;  %s4673_s19 = smov %s3104_s20 }
 0x333   : > { %s4674_s20 = smov %s3279_s16  ;;  %s4675_s21 = smov %s3112_s22 }
 0x334   : > { %s4676_s22 = smov %s4678_s14  ;;  %22 = sbr.rel (!%p20_p13) target bundleno = 8 (0x8), region = 108 }
 0x33b   :  { %1975 = vsyncpa [#allocation4], 1 }
 0x33c   :  { %1977 = vsyncpa [#allocation4 + $0x1], 1 }
 0x33d   :  { %1978 = vsyncpa [#allocation7], 1 }
 0x33e   :  { %1980 = vsyncpa [#allocation7 + $0x1], 1 }
 0x33f   :  { %1981 = vsyncpa [#allocation10], 1 }
 0x340   :  { %1982 = vsyncpa [#allocation5], 1 }
 0x341   :  { %1984 = vsyncpa [#allocation5 + $0x1], 1 }

</bundles_post_ra>
